<compile_context>
chip_gen: v7x
topology: tpu7x:2x2x1
jax: 0.10.0
libtpu: 0.0.40
codegen_flags: <defaults>
</compile_context>

<pallas_src>
import functools

import jax
import jax.numpy as jnp
from jax.experimental import pallas as pl
from jax.experimental.pallas import tpu as pltpu


# --------------------------- VMEM-aware budgets ----------------------------

@functools.lru_cache(maxsize=None)
def _vmem_budgets():
    """(vmem_limit_bytes, x-block byte budget), derived from the chip."""
    fallback = 64 * 1024 * 1024            # v7x per-TC VMEM (most restrictive)
    try:
        info = pltpu.get_tpu_info()
        vmem = int(getattr(info, "vmem_capacity_bytes", fallback))
    except Exception:
        vmem = fallback
    # Leave headroom for Mosaic internals; cap at 96 MiB.
    vmem_limit = int(min(vmem * 3 // 4, 96 * 1024 * 1024))
    # One x block; 2x double-buffered input + 2x output + small temps fit.
    block_budget = int(max(2 * 1024 * 1024, vmem_limit // 5))
    return vmem_limit, block_budget


# ----------------------------- SE parameters ------------------------------

def _pack_se_params(w1, b1, w2, b2):
    """Pack (w1, b1, w2, b2) into one (C + hid + 2, C) f32 block.

    Rows [0, C)       : w1.T  (C, hid)   (unused lanes zero)
    Rows [C, C+hid)   : w2.T  (hid, C)
    Row  C + hid      : b1    (hid,)
    Row  C + hid + 1  : b2    (C,)
    """
    hid, C = w1.shape
    p = jnp.zeros((C + hid + 2, C), jnp.float32)
    p = p.at[0:C, 0:hid].set(w1.T.astype(jnp.float32))
    p = p.at[C:C + hid, 0:C].set(w2.T.astype(jnp.float32))
    p = p.at[C + hid, 0:hid].set(b1.reshape(hid).astype(jnp.float32))
    p = p.at[C + hid + 1, 0:C].set(b2.reshape(C).astype(jnp.float32))
    return p


def _se_fc(gap, p, C, hid):
    """FC1 -> ReLU -> FC2 -> sigmoid on a lane-dense (Bt, C) GAP."""
    w1t = p[0:C, 0:hid]                       # (C, hid)
    w2t = p[C:C + hid, 0:C]                   # (hid, C)
    b1 = p[C + hid:C + hid + 1, 0:hid]        # (1, hid)
    b2 = p[C + hid + 1:C + hid + 2, 0:C]      # (1, C)
    h = jnp.maximum(
        jnp.dot(gap, w1t, preferred_element_type=jnp.float32) + b1, 0.0)
    return jax.nn.sigmoid(
        jnp.dot(h, w2t, preferred_element_type=jnp.float32) + b2)


# ------------------------------- SE kernels -------------------------------

def _se_fused_kernel(x_ref, p_ref, o_ref, *, C, hid, inv_hw):
    # GAP directly from the ref; do NOT hold a full f32 copy live across the
    # FC (halves peak VMEM for bf16 inputs) — re-read x_ref for the rescale.
    gap = jnp.sum(x_ref[...].astype(jnp.float32), axis=2) * inv_hw   # (Bt, C)
    s = _se_fc(gap, p_ref[...], C, hid)                              # (Bt, C)
    o_ref[...] = (x_ref[...].astype(jnp.float32) * s[:, :, None]
                  ).astype(o_ref.dtype)


def _se_weights_kernel(x_ref, p_ref, w_ref, acc_ref, *,
                       C, hid, inv_hw, tHW, HW, masked):
    # grid = (B tiles 'parallel', HW tiles 'arbitrary'); HW is innermost so
    # the guarded accumulate / final write pattern stays valid per B tile.
    hw = pl.program_id(1)

    @pl.when(hw == 0)
    def _():
        acc_ref[...] = jnp.zeros_like(acc_ref)

    x = x_ref[...].astype(jnp.float32)                 # (Bt, C, tHW)
    if masked:                                         # boundary tile: zero pad cols
        col = jax.lax.broadcasted_iota(jnp.int32, x.shape, 2)
        x = jnp.where(hw * tHW + col < HW, x, 0.0)
    acc_ref[...] += jnp.sum(x, axis=2)

    @pl.when(hw == pl.num_programs(1) - 1)
    def _():
        w_ref[...] = _se_fc(acc_ref[...] * inv_hw, p_ref[...], C, hid)


def _se_scale_kernel(x_ref, w_ref, o_ref):
    x = x_ref[...].astype(jnp.float32)                 # (B, C, tHW)
    o_ref[...] = (x * w_ref[...][:, :, None]).astype(o_ref.dtype)


# ----------------------------- tiling helpers ------------------------------

def _largest_divisor_leq(n, cap):
    cap = max(1, min(n, cap))
    for d in range(cap, 0, -1):
        if n % d == 0:
            return d
    return 1


def _choose_hw_tile(HW, bytes_per_hw, budget):
    """Largest lane-dense HW tile whose block fits `budget` bytes.

    Returns (tHW, needs_mask); needs_mask=True when tHW does not divide HW
    (boundary block padded -> the GAP pass must mask the padded columns)."""
    cap = max(128, budget // max(1, bytes_per_hw))
    if HW <= cap:
        return HW, False
    best = 0
    limit = min(HW, cap)
    t = 128
    while t <= limit:
        if HW % t == 0:
            best = t
        t += 128
    if best:
        return best, False
    t = max(128, (limit // 128) * 128)     # budget-clamped, cdiv grid + mask
    return t, (HW % t != 0)


def _choose_weights_btile(B, C, itemsize, budget):
    """Batch tile for the GAP/FC pass: >=2 tiles when the (Bt, C) output
    block can keep its sublane dim a multiple of 8; else the full batch."""
    cap = max(8, budget // max(1, C * 128 * itemsize))
    for bt in range(min(B // 2, cap), 7, -1):
        if B % bt == 0 and bt % 8 == 0:
            return bt
    return B


def _buffered_spec(block_shape, index_map, buffers):
    """BlockSpec with a deeper pipeline when the API supports it."""
    try:
        return pl.BlockSpec(block_shape, index_map,
                            pipeline_mode=pl.Buffered(buffers))
    except Exception:
        return pl.BlockSpec(block_shape, index_map)


# ----------------------------- SE block wrapper ----------------------------

def se_block(x, w1, b1, w2, b2, *, block_bytes_budget=None, donate_input=False):
    """SEBlock forward.  x: (B, C, H, W); w1: (hid, C); b1: (hid,);
    w2: (C, hid); b2: (C,).  Returns (B, C, H, W) in x.dtype."""
    B, C, H, W = x.shape
    HW = H * W
    hid = w1.shape[0]
    P = C + hid + 2
    itemsize = jnp.dtype(x.dtype).itemsize

    vmem_limit, default_budget = _vmem_budgets()
    if block_bytes_budget is None:
        block_bytes_budget = default_budget

    params = _pack_se_params(w1, b1, w2, b2)
    xf = x.reshape(B, C, HW)
    inv_hw = 1.0 / float(HW)
    io_alias = {0: 0} if donate_input else {}

    slab_bytes = C * HW * itemsize
    if slab_bytes <= block_bytes_budget:
        # ---- single fused pass: x read from HBM exactly once ----
        # >= 2 grid steps (Bt <= B//2) so prefetch/compute/writeback overlap.
        cap = max(1, min(block_bytes_budget // slab_bytes, max(1, B // 2)))
        Bt = _largest_divisor_leq(B, cap)
        out = pl.pallas_call(
            functools.partial(_se_fused_kernel, C=C, hid=hid, inv_hw=inv_hw),
            out_shape=jax.ShapeDtypeStruct((B, C, HW), x.dtype),
            grid_spec=pltpu.PrefetchScalarGridSpec(
                num_scalar_prefetch=0,
                grid=(B // Bt,),
                in_specs=[
                    pl.BlockSpec((Bt, C, HW), lambda b: (b, 0, 0)),
                    pl.BlockSpec((P, C), lambda b: (0, 0)),
                ],
                out_specs=pl.BlockSpec((Bt, C, HW), lambda b: (b, 0, 0)),
            ),
            compiler_params=pltpu.CompilerParams(
                dimension_semantics=("parallel",),
                vmem_limit_bytes=vmem_limit),
            input_output_aliases=io_alias,
        )(xf, params)
    else:
        # ---- two-pass fallback ----
        # pass 1: GAP over HW tiles + FC -> per-(B, C) sigmoid weights.
        Bt_w = _choose_weights_btile(B, C, itemsize, block_bytes_budget)
        tHW1, mask1 = _choose_hw_tile(HW, Bt_w * C * itemsize,
                                      block_bytes_budget)
        n_hw1 = pl.cdiv(HW, tHW1)
        weights = pl.pallas_call(
            functools.partial(_se_weights_kernel, C=C, hid=hid, inv_hw=inv_hw,
                              tHW=tHW1, HW=HW, masked=mask1),
            out_shape=jax.ShapeDtypeStruct((B, C), jnp.float32),
            grid_spec=pltpu.PrefetchScalarGridSpec(
                num_scalar_prefetch=0,
                grid=(B // Bt_w, n_hw1),
                in_specs=[
                    pl.BlockSpec((Bt_w, C, tHW1), lambda b, hw: (b, 0, hw)),
                    pl.BlockSpec((P, C), lambda b, hw: (0, 0)),
                ],
                out_specs=pl.BlockSpec((Bt_w, C), lambda b, hw: (b, 0)),
                scratch_shapes=[pltpu.VMEM((Bt_w, C), jnp.float32)],
            ),
            compiler_params=pltpu.CompilerParams(
                dimension_semantics=("parallel", "arbitrary"),
                vmem_limit_bytes=vmem_limit),
        )(xf, params)

        # pass 2: pure streaming elementwise rescale, lane-dense HW tiles.
        tHW2, _ = _choose_hw_tile(HW, B * C * itemsize, block_bytes_budget)
        n_hw2 = pl.cdiv(HW, tHW2)
        out = pl.pallas_call(
            _se_scale_kernel,
            out_shape=jax.ShapeDtypeStruct((B, C, HW), x.dtype),
            grid_spec=pltpu.PrefetchScalarGridSpec(
                num_scalar_prefetch=0,
                grid=(n_hw2,),
                in_specs=[
                    _buffered_spec((B, C, tHW2), lambda hw: (0, 0, hw), 3),
                    pl.BlockSpec((B, C), lambda hw: (0, 0)),
                ],
                out_specs=pl.BlockSpec((B, C, tHW2), lambda hw: (0, 0, hw)),
            ),
            compiler_params=pltpu.CompilerParams(
                dimension_semantics=("parallel",),
                vmem_limit_bytes=vmem_limit),
            input_output_aliases=io_alias,
        )(xf, weights)
    return out.reshape(B, C, H, W)


def se_reference(x, w1, b1, w2, b2):
    """Pure-JAX reference matching the PyTorch SEBlock forward exactly."""
    gap = jnp.mean(x.astype(jnp.float32), axis=(2, 3))             # (B, C)
    h = jnp.maximum(gap @ w1.T + b1[None, :], 0.0)                 # (B, hid)
    s = jax.nn.sigmoid(h @ w2.T + b2[None, :])                     # (B, C)
    return (x.astype(jnp.float32) * s[:, :, None, None]).astype(x.dtype)


# ------------------- UNet_Attention (encoder / decoder) -------------------
# TODO(synk): the Conv2d / MaxPool2d / ConvTranspose2d layers are left to XLA
# (jax.lax) ops; only the SE attention hot path is a custom Pallas kernel.

def _conv2d(x, w, b, padding):
    y = jax.lax.conv_general_dilated(
        x, w, window_strides=(1, 1),
        padding=((padding, padding), (padding, padding)),
        dimension_numbers=("NCHW", "OIHW", "NCHW"))
    return y + b[None, :, None, None]


def _maxpool2(x):
    return jax.lax.reduce_window(
        x, -jnp.inf, jax.lax.max,
        window_dimensions=(1, 1, 2, 2),
        window_strides=(1, 1, 2, 2),
        padding="VALID")


def _conv_transpose2d(x, w, b, stride):
    # w in PyTorch ConvTranspose2d layout: (in_ch, out_ch, kH, kW).
    # ConvTranspose2d(stride=s, padding=0) == fractionally-strided conv with
    # lhs_dilation=s, (k-1) padding, spatially flipped kernel, I/O swapped.
    kH, kW = int(w.shape[2]), int(w.shape[3])
    w_t = jnp.transpose(jnp.flip(w, axis=(2, 3)), (1, 0, 2, 3))  # (out, in, kH, kW)
    y = jax.lax.conv_general_dilated(
        x, w_t, window_strides=(1, 1),
        padding=((kH - 1, kH - 1), (kW - 1, kW - 1)),
        lhs_dilation=(stride, stride),
        dimension_numbers=("NCHW", "OIHW", "NCHW"))
    return y + b[None, :, None, None]


def init_unet_params(key, n_classes=28, channel=128, ratio=16):
    hid = channel // ratio
    ks = jax.random.split(key, 9)

    def w(k, shape, fan_in):
        return jax.random.normal(k, shape, jnp.float32) * (1.0 / (fan_in ** 0.5))

    return {
        "e1_w": w(ks[0], (64, 3, 3, 3), 3 * 9),       "e1_b": jnp.zeros((64,), jnp.float32),
        "e2_w": w(ks[1], (128, 64, 3, 3), 64 * 9),    "e2_b": jnp.zeros((128,), jnp.float32),
        "se_w1": w(ks[2], (hid, channel), channel),
        "se_b1": 0.1 * jax.random.normal(ks[3], (hid,), jnp.float32),
        "se_w2": w(ks[4], (channel, hid), hid),
        "se_b2": 0.1 * jax.random.normal(ks[5], (channel,), jnp.float32),
        "d1_w": w(ks[6], (128, 64, 2, 2), 128 * 4),   "d1_b": jnp.zeros((64,), jnp.float32),
        "d2_w": w(ks[7], (64, 32, 2, 2), 64 * 4),     "d2_b": jnp.zeros((32,), jnp.float32),
        "d3_w": w(ks[8], (n_classes, 32, 1, 1), 32),  "d3_b": jnp.zeros((n_classes,), jnp.float32),
    }


def unet_attention_forward(params, x):
    # encoder
    h = jax.nn.relu(_conv2d(x, params["e1_w"], params["e1_b"], padding=1))
    h = _maxpool2(h)
    h = jax.nn.relu(_conv2d(h, params["e2_w"], params["e2_b"], padding=1))
    h = _maxpool2(h)
    # SE attention (Pallas); h is an intermediate -> safe to alias in-place.
    h = se_block(h, params["se_w1"], params["se_b1"],
                 params["se_w2"], params["se_b2"], donate_input=True)
    # decoder
    h = jax.nn.relu(_conv_transpose2d(h, params["d1_w"], params["d1_b"], stride=2))
    h = jax.nn.relu(_conv_transpose2d(h, params["d2_w"], params["d2_b"], stride=2))
    h = _conv2d(h, params["d3_w"], params["d3_b"], padding=0)
    return h


# ----------------------------------- main ----------------------------------

if __name__ == "__main__":
    key = jax.random.PRNGKey(0)
    k_se, k_unet, k_in, k_odd = jax.random.split(key, 4)

    # --- standalone SE checks (same channel count as inside the UNet) ---
    B, C, H, W = 2, 128, 32, 32
    ratio = 16
    hid = C // ratio
    k1, k2, k3, k4, kx = jax.random.split(k_se, 5)
    x_se = jax.random.normal(kx, (B, C, H, W), dtype=jnp.float32)
    w1 = 0.1 * jax.random.normal(k1, (hid, C), dtype=jnp.float32)
    b1 = 0.1 * jax.random.normal(k2, (hid,), dtype=jnp.float32)
    w2 = 0.1 * jax.random.normal(k3, (C, hid), dtype=jnp.float32)
    b2 = 0.1 * jax.random.normal(k4, (C,), dtype=jnp.float32)

    ref = se_reference(x_se, w1, b1, w2, b2)

    # 1) fused single-pass path (VMEM-aware budget, >=2 grid steps).
    out_fused = se_block(x_se, w1, b1, w2, b2)
    jax.block_until_ready(out_fused)
    assert out_fused.shape == (B, C, H, W)
    assert jnp.allclose(out_fused, ref, atol=2e-5, rtol=1e-5), "fused SE mismatch"

    # 2) force the tiled two-pass path (GAP/FC pass + HW-tiled rescale pass).
    out_tiled = se_block(x_se, w1, b1, w2, b2, block_bytes_budget=300 * 1024)
    jax.block_until_ready(out_tiled)
    assert jnp.allclose(out_tiled, ref, atol=2e-5, rtol=1e-5), "tiled SE mismatch"

    # 3) two-pass path with batch-parallel GAP grid + non-divisible HW (masked
    #    boundary tile, cdiv grid) — hardening exercised explicitly.
    xo = jax.random.normal(k_odd, (16, C, 17, 17), dtype=jnp.float32)
    ref_odd = se_reference(xo, w1, b1, w2, b2)
    out_odd = se_block(xo, w1, b1, w2, b2, block_bytes_budget=64 * 1024)
    jax.block_until_ready(out_odd)
    assert jnp.allclose(out_odd, ref_odd, atol=2e-5, rtol=1e-5), "masked SE mismatch"

    # --- full UNet_Attention forward: encoder -> SE (Pallas) -> decoder ---
    params = init_unet_params(k_unet, n_classes=28)
    x_in = jax.random.normal(k_in, (2, 3, 64, 64), dtype=jnp.float32)
    y = jax.jit(unet_attention_forward)(params, x_in)
    jax.block_until_ready(y)
    assert y.shape == (2, 28, 64, 64)
    assert bool(jnp.all(jnp.isfinite(y)))

    print("KERNEL_OK")
</pallas_src>

<mosaic_0001>
module attributes {stable_mosaic.version = 11 : i64} {
  func.func @_se_fused_kernel(%arg0: i32, %arg1: memref<1x128x1024xf32, #tpu.memory_space<vmem>>, %arg2: memref<138x128xf32, #tpu.memory_space<vmem>>, %arg3: memref<1x128x1024xf32, #tpu.memory_space<vmem>>) attributes {dimension_semantics = [#tpu.dimension_semantics<parallel>], iteration_bounds = array<i64: 2>, scalar_prefetch = 0 : i64, scratch_operands = 0 : i64, tpu.core_type = #tpu.core_type<tc>, window_params = [{transform_indices = @transform_0, window_bounds = array<i64: 1, 128, 1024>}, {pipeline_mode = #tpu.pipeline_mode<synchronous>, transform_indices = @transform_1, window_bounds = array<i64: 138, 128>}, {transform_indices = @transform_2, window_bounds = array<i64: 1, 128, 1024>}]} {
    %c0 = arith.constant 0 : index
    %c0_0 = arith.constant 0 : index
    %c0_1 = arith.constant 0 : index
    %0 = vector.load %arg1[%c0, %c0_0, %c0_1] : memref<1x128x1024xf32, #tpu.memory_space<vmem>>, vector<1x128x1024xf32>
    %cst = arith.constant dense<0.000000e+00> : vector<1x128xf32>
    %1 = vector.multi_reduction <add>, %0, %cst [2] : vector<1x128x1024xf32> to vector<1x128xf32>
    %cst_2 = arith.constant 9.765625E-4 : f32
    %2 = vector.broadcast %cst_2 : f32 to vector<1x128xf32>
    %3 = arith.mulf %1, %2 : vector<1x128xf32>
    %c0_3 = arith.constant 0 : index
    %c0_4 = arith.constant 0 : index
    %4 = vector.load %arg2[%c0_3, %c0_4] : memref<138x128xf32, #tpu.memory_space<vmem>>, vector<138x128xf32>
    %5 = vector.extract_strided_slice %4 {offsets = [0, 0], sizes = [128, 8], strides = [1, 1]} : vector<138x128xf32> to vector<128x8xf32>
    %6 = vector.extract_strided_slice %4 {offsets = [128, 0], sizes = [8, 128], strides = [1, 1]} : vector<138x128xf32> to vector<8x128xf32>
    %7 = vector.extract_strided_slice %4 {offsets = [136, 0], sizes = [1, 8], strides = [1, 1]} : vector<138x128xf32> to vector<1x8xf32>
    %8 = vector.extract_strided_slice %4 {offsets = [137, 0], sizes = [1, 128], strides = [1, 1]} : vector<138x128xf32> to vector<1x128xf32>
    %cst_5 = arith.constant dense<0.000000e+00> : vector<1x8xf32>
    %9 = tpu.matmul %3, %5, %cst_5 {dimension_numbers = #tpu.dot_dimension_numbers<[1], [0], [0], [1], [0, 0, 1, 1], [], []>} : vector<1x128xf32>, vector<128x8xf32>, vector<1x8xf32> -> vector<1x8xf32>
    %10 = arith.addf %9, %7 : vector<1x8xf32>
    %cst_6 = arith.constant 0.000000e+00 : f32
    %11 = vector.broadcast %cst_6 : f32 to vector<1x8xf32>
    %12 = arith.maximumf %10, %11 : vector<1x8xf32>
    %cst_7 = arith.constant dense<0.000000e+00> : vector<1x128xf32>
    %13 = tpu.matmul %12, %6, %cst_7 {dimension_numbers = #tpu.dot_dimension_numbers<[1], [0], [0], [1], [0, 0, 1, 1], [], []>} : vector<1x8xf32>, vector<8x128xf32>, vector<1x128xf32> -> vector<1x128xf32>
    %14 = arith.addf %13, %8 : vector<1x128xf32>
    %15 = arith.negf %14 : vector<1x128xf32>
    %16 = math.exp %15 : vector<1x128xf32>
    %cst_8 = arith.constant 1.000000e+00 : f32
    %17 = vector.broadcast %cst_8 : f32 to vector<1x128xf32>
    %18 = arith.addf %17, %16 : vector<1x128xf32>
    %19 = arith.divf %17, %18 : vector<1x128xf32>
    %c0_9 = arith.constant 0 : index
    %c0_10 = arith.constant 0 : index
    %c0_11 = arith.constant 0 : index
    %20 = vector.load %arg1[%c0_9, %c0_10, %c0_11] : memref<1x128x1024xf32, #tpu.memory_space<vmem>>, vector<1x128x1024xf32>
    %21 = vector.shape_cast %19 : vector<1x128xf32> to vector<1x128x1xf32>
    %22 = vector.broadcast %21 : vector<1x128x1xf32> to vector<1x128x1024xf32>
    %23 = arith.mulf %20, %22 : vector<1x128x1024xf32>
    %c0_12 = arith.constant 0 : index
    %c0_13 = arith.constant 0 : index
    %c0_14 = arith.constant 0 : index
    %24 = vector.load %arg3[%c0_12, %c0_13, %c0_14] : memref<1x128x1024xf32, #tpu.memory_space<vmem>>, vector<1x128x1024xf32>
    tpu.vector_store %arg3[%c0_12, %c0_13, %c0_14], %23 {strides = array<i32>} : memref<1x128x1024xf32, #tpu.memory_space<vmem>>, vector<1x128x1024xf32>,
    return
  }
  func.func @transform_0(%arg0: i32) -> (i32, i32, i32) {
    %c0_i32 = arith.constant 0 : i32
    %c0_i32_0 = arith.constant 0 : i32
    %c0_i32_1 = arith.constant 0 : i32
    return %arg0, %c0_i32, %c0_i32_0 : i32, i32, i32
  }
  func.func @transform_1(%arg0: i32) -> (i32, i32) {
    %c0_i32 = arith.constant 0 : i32
    %c0_i32_0 = arith.constant 0 : i32
    %c0_i32_1 = arith.constant 0 : i32
    return %c0_i32, %c0_i32_0 : i32, i32
  }
  func.func @transform_2(%arg0: i32) -> (i32, i32, i32) {
    %c0_i32 = arith.constant 0 : i32
    %c0_i32_0 = arith.constant 0 : i32
    %c0_i32_1 = arith.constant 0 : i32
    return %arg0, %c0_i32, %c0_i32_0 : i32, i32, i32
  }
}

</mosaic_0001>

<bundles_post_ra>
// kernel: tpu_custom_call.1
= control target key start
LH: loop header
LB: loop body
LE: loop exit
PB: predicated region body
PF: predicated region fallthrough
CT: control target
= control target key end

     0   :  { %7 = vsyncpa [#allocation3], 0  ;;  %s2538_s0 = inlined_call_operand.hbm [shape: f32[2,128,1024], index: 0, kind: input, shape index: {}]   ;;  %s2539_s1 = inlined_call_operand.hbm [shape: f32[138,128], index: 1, kind: input, shape index: {}]   ;;  %s2540_s2 = inlined_call_operand.hbm [shape: f32[2,128,1024], index: 2, kind: output, shape index: {}]  }
   0x1   :  { %9 = vsyncpa [#allocation3 + $0x1], 0 }
   0x2   :  { %10 = vsyncpa [#allocation6], 0 }
   0x3   :  { %11 = vsyncpa [#allocation4], 0 }
   0x4   :  { %13 = vsyncpa [#allocation4 + $0x1], 0  ;;  %s1515_s9 = smov 0   ;;  %s1517_s10 = smov 0  }
   0x5   :  { %s1519_s11 = smov 0   ;;  %s1521_s12 = smov 0  }
   0x6 LB: > { %s1536_s13 = sadd.s32 4294967295, %s1486_s12   ;;  %s1185_s14 = sadd.s32 4294967294, %s1486_s12   ;;  %s1486_s12 = sphi %s1521_s12, %s2833_s12   ;;  %s1482_s11 = sphi %s1519_s11, %s2832_s11   ;;  %s1478_s10 = sphi %s1517_s10, %s2831_s10   ;;  %s1474_s9 = sphi %s1515_s9, %s2830_s9  }
   0x7   : > { %p39_p0 = scmp.ne.s32.totalorder %s1478_s10, %s1474_s9  ;;  %p2541_p1 = scmp.eq.s32.totalorder %s1536_s13, 0 }
   0x8   : > { %p90_p3 = scmp.eq.s32.totalorder %s1185_s14, 1  ;;  %p1186_p5 = scmp.ge.s32.totalorder %s1486_s12, 1 }
   0x9   : > { %p1545_p4 = por %p2541_p1, %p39_p0  ;;  %p97_p7 = scmp.lt.s32.totalorder %s1486_s12, 3 }
   0xa   : > { %p1550_p6 = por %p90_p3, %p39_p0  ;;  %s1488_s18 = smov [#allocation5]  }
   0xb   : > { %s2636_s15 = scalar_select %p1545_p4, 1, 0 }
   0xc   : > { %s2637_s16 = scalar_select %p1550_p6, 1, 0 }
   0xd   : > { %p1555_p8 = pnand %p1186_p5, %p97_p7  ;;  %s109_s19 = sshll.u32 %s1488_s18, 4  ;;  %s1559_s19 = int_to_ptr.vmem [resolvable:$true] %s109_s19 }
   0xe   : > { %s1571_s21 = sadd.s32 1, %s1486_s12   ;;  %s26_s22 = sadd.s32 1, %s1482_s11 }
   0xf   : > { %s2638_s17 = scalar_select %p1555_p8, 1, 0 }
  0x10   : > { %p1296_p9 = pneg %p1555_p8  ;;  %s23_s23 = ssub.s32 %s1486_s12, %s1571_s21 }
  0x11   : > { %s1358_s26 = scalar_lea.hbm %s2539_s1, 2304 }
  0x12   : > { %p1566_p11 = pnand %p1296_p9, %p2541_p1  ;;  %p1359_p12 = scmp.ne.s32.totalorder %s2539_s1, %s1358_s26 }
  0x13   : > { %p1365_p5 = scmp.lt.u32.totalorder %s1358_s26, %s2539_s1 }
  0x14   : > { %p1360_p13 = pneg %p1566_p11 }
  0x16   : > { %p1361_p0 = pnand %p1360_p13, %p1359_p12 }
  0x18   : > { %p1362_p3 = pneg %p1361_p0 }
  0x1a   : > { %p1367_p7 = pnand %p1365_p5, %p1362_p3 }
  0x1c   : > { %1370 = shalt.err (!%p1367_p7)
}
  0x1d   : > { %s1371_s3 = scalar_lea.vmem %s1559_s19, 2304  ;;  %p1379_p2 = scmp.lt.s32.totalorder %s1559_s19, %s1559_s19 }
  0x1e   : > { %p1372_p9 = scmp.ne.s32.totalorder %s1559_s19, %s1371_s3  ;;  %p1380_p6 = scmp.lt.s32.totalorder %s1371_s3, %s1371_s3 }
  0x20   : > { %p1374_p10 = pnand %p1372_p9, %p1360_p13  ;;  %p1381_p4 = por %p1380_p6, %p1379_p2 }
  0x22   : > { %p1375_p1 = pneg %p1374_p10 }
  0x24   : > { %p1382_p8 = pnand %p1381_p4, %p1375_p1 }
  0x26   : > { %1385 = shalt.err (!%p1382_p8)
}
  0x27   : > { %s1489_s4 = smov 128   ;;  %s1490_s5 = smov 8  }
  0x28   : > { %1299 = dma.hbm_to_vmem [thread:$0]  (!%p1566_p11), %s2539_s1, 2304, %s1559_s19, [#allocation6], %s1489_s4, %s1489_s4, %s1490_s5  }
  0x29   : > { %p24_p2 = scmp.eq.s32.totalorder %s23_s23, 0  ;;  %p33_p1 = scmp.ne.s32.totalorder %s1482_s11, %s1478_s10 }
  0x2a   : > { %p34_p4 = scmp.eq.s32.totalorder %s1486_s12, 0  ;;  %p1309_p6 = scmp.lt.s32.totalorder %s1486_s12, 2 }
  0x2b   : > { %s1602_s8 = scalar_select %p24_p2, %s1482_s11, %s26_s22  }
  0x2c   : > { %p35_p8 = por %p34_p4, %p33_p1  ;;  %p2640_p10 = scmp.eq.s32.totalorder %s1536_s13, 1 }
  0x2d   : > { %s123_s18 = sand.u32 1, %s1482_s11   ;;  %s1203_s24 = sshll.u32 %s1486_s12, 14 }
  0x2e   : > { %p1606_p12 = por %p2640_p10, %p33_p1  ;;  %s1189_s25 = sshll.u32 %s123_s18, 10 }
  0x2f   : > { %s1615_s27 = scalar_lea.hbm %s2538_s0, %s1203_s24  ;;  %s127_s19 = scalar_lea.vmem [#allocation2], %s1189_s25 }
  0x30   : > { %s134_s22 = sshll.u32 %s127_s19, 4  ;;  %p1617_p11 = pnand %p1309_p6, %p35_p8  ;;  %s1621_s22 = int_to_ptr.vmem [resolvable:$true] %s134_s22 }
  0x31   : > { %s1623_s28 = scalar_lea.sflag [#allocation3], %s123_s18  ;;  %s1386_s29 = scalar_lea.hbm %s1615_s27, 16384 }
  0x32   : > { %p1387_p13 = scmp.ne.s32.totalorder %s1615_s27, %s1386_s29  ;;  %p1388_p0 = pneg %p1617_p11 }
  0x33   : > { %s1391_s4 = scalar_lea.hbm %s2538_s0, 32768  ;;  %p1392_p7 = scmp.lt.u32.totalorder %s1615_s27, %s2538_s0 }
  0x34   : > { %p1389_p3 = pnand %p1388_p0, %p1387_p13  ;;  %p1393_p9 = scmp.lt.u32.totalorder %s1391_s4, %s1386_s29 }
  0x35   : > { %p1395_p1 = scmp.lt.u32.totalorder %s1386_s29, %s1615_s27 }
  0x36   : > { %p1390_p5 = pneg %p1389_p3  ;;  %p1394_p2 = por %p1393_p9, %p1392_p7 }
  0x38   : > { %p1396_p4 = por %p1395_p1, %p1394_p2 }
  0x3a   : > { %p1397_p6 = pnand %p1396_p4, %p1390_p5 }
  0x3c   : > { %1400 = shalt.err (!%p1397_p6)
}
  0x3d   : > { %s1401_s7 = scalar_lea.vmem %s1621_s22, 16384  ;;  %s1491_s18 = smov [#allocation2]  }
  0x3e   : > { %p1402_p8 = scmp.ne.s32.totalorder %s1621_s22, %s1401_s7  ;;  %s1406_s24 = sshll.u32 %s1491_s18, 4  ;;  %s1407_s24 = int_to_ptr.vmem [resolvable:$false] %s1406_s24 }
  0x3f   : > { %s1408_s25 = scalar_lea.vmem %s1407_s24, 32768  ;;  %p1409_p3 = scmp.lt.s32.totalorder %s1621_s22, %s1407_s24 }
  0x40   : > { %p1404_p10 = pnand %p1402_p8, %p1388_p0  ;;  %p1410_p7 = scmp.lt.s32.totalorder %s1408_s25, %s1401_s7 }
  0x42   : > { %p1405_p13 = pneg %p1404_p10  ;;  %p1411_p9 = por %p1410_p7, %p1409_p3 }
  0x44   : > { %p1412_p2 = pnand %p1411_p9, %p1405_p13 }
  0x46   : > { %1415 = shalt.err (!%p1412_p2)
}
  0x47   : > { %s1492_s20 = smov 1024   ;;  %s1493_s26 = smov 64  }
  0x48   : > { %1303 = dma.hbm_to_vmem [thread:$0]  (!%p1617_p11), %s1615_s27, 16384, %s1621_s22, %s1623_s28, %s1492_s20, %s1492_s20, %s1493_s26  }
  0x49   : > { %p2643_p0 = scmp.ne.s32.totalorder %s2638_s17, 0 }
  0x4b   : > { %146 = sbr.rel (%p2643_p0) target bundleno = 954 (0x3ba), region = 28 }
  0x52   : > { %s1654_s19 = sand.u32 1, %s1478_s10   ;;  %p2644_p5 = scmp.ne.s32.totalorder %s2636_s15, 0 }
  0x53   : > { %s1193_s29 = sshll.u32 %s1654_s19, 10  ;;  %s149_s30 = scalar_lea.sflag [#allocation3], %s1654_s19 }
  0x54   : > { %s1660_s3 = scalar_lea.vmem [#allocation2], %s1193_s29 }
  0x55   : > { %1461 = dma.done.wait (%p2644_p5), %s149_s30, 16384  }
  0x56   : > { %1463 = vsyncadd (%p2644_p5), %s149_s30, 4294950912  ;;  %p2645_p11 = scmp.eq.s32.totalorder %s1536_s13, 0 }
  0x58   : > { %1465 = dma.done.wait (%p2645_p11), [#allocation6], 2304   ;;  %p2646_p1 = pmov %p2645_p11 }
  0x59   : > { %v1671_v0 = vld [vmem:[%s1660_s3] sm:$0xff]  ;;  %v1674_v1 = vld [vmem:[%s1660_s3 + $0x8] sm:$0xff]  ;;  %v1677_v2 = vld [vmem:[%s1660_s3 + $0x10] sm:$0xff]  ;;  %vm1495_vm0 = vmmov 0   ;;  %vm510_vm1 = vcmask 130112   ;;  %vm517_vm2 = vcmask 195712  }
  0x5a   : > { %1467 = vsyncadd (%p2646_p1), [#allocation6], 4294964992  ;;  %v305_v3 = vadd.f32 %v1674_v1, %v1671_v0  ;;  %v1682_v4 = vld [vmem:[%s1660_s3 + $0x18] sm:$0xff]  ;;  %v1685_v5 = vld [vmem:[%s1660_s3 + $0x80] sm:$0xff]  ;;  %vm524_vm3 = vcmask 261312   ;;  %vm531_vm4 = vcmask 326912  }
  0x5b   : > { %v1689_v7 = vld [vmem:[%s1660_s3 + $0x88] sm:$0xff]  ;;  %v1692_v8 = vld [vmem:[%s1660_s3 + $0x90] sm:$0xff]  ;;  %v1695_v9 = vld [vmem:[%s1660_s3 + $0x20] sm:$0xff]  ;;  %vm538_vm5 = vcmask 392512   ;;  %vm545_vm6 = vcmask 458112   ;;  %vm552_vm7 = vcmask 523712  }
  0x5c   : > { %v306_v6 = vadd.f32 %v305_v3, %v1677_v2  ;;  %v323_v10 = vadd.f32 %v1689_v7, %v1685_v5  ;;  %v1701_v12 = vld [vmem:[%s1660_s3 + $0x98] sm:$0xff]  ;;  %v1704_v13 = vld [vmem:[%s1660_s3 + $0x40] sm:$0xff]  ;;  %v1707_v14 = vld [vmem:[%s1660_s3 + $0x48] sm:$0xff]  ;;  %vm559_vm8 = vcmask 589312   ;;  %vm566_vm9 = vcmask 654912   ;;  %s2237_s15 = scalar_lea.vmem [#allocation7], %s1193_s29 }
  0x5d   : > { %v1710_v15 = vld [vmem:[%s1660_s3 + $0x28] sm:$0xff]  ;;  %v1714_v17 = vld [vmem:[%s1660_s3 + $0x50] sm:$0xff]  ;;  %v314_v18 = vadd.f32 %v1707_v14, %v1704_v13  ;;  %v1723_v21 = vld [vmem:[%s1660_s3 + $0xa0] sm:$0xff]  ;;  %vm573_vm10 = vcmask 720512   ;;  %vm580_vm11 = vcmask 786112   ;;  %vm587_vm12 = vcmask 851712  }
  0x5e   : > { %v307_v11 = vadd.f32 %v306_v6, %v1682_v4  ;;  %v324_v16 = vadd.f32 %v323_v10, %v1692_v8  ;;  %v1719_v19 = vld [vmem:[%s1660_s3 + $0x30] sm:$0xff]  ;;  %v1726_v22 = vld [vmem:[%s1660_s3 + $0x58] sm:$0xff]  ;;  %v1731_v25 = vld [vmem:[%s1660_s3 + $0xc0] sm:$0xff]  ;;  %vm594_vm13 = vcmask 917312   ;;  %vm601_vm14 = vcmask 982912   ;;  %s1204_s17 = sshll.u32 %s1536_s13, 14 }
  0x5f   : > { %v315_v24 = vadd.f32 %v314_v18, %v1714_v17  ;;  %v1734_v26 = vld [vmem:[%s1660_s3 + $0xc8] sm:$0xff]  ;;  %v1737_v27 = vld [vmem:[%s1660_s3 + $0xd0] sm:$0xff]  ;;  %v1740_v28 = vld [vmem:[%s1660_s3 + $0x38] sm:$0xff]  ;;  %vm608_vm15 = vcmask 1048512   ;;  %s1102_s27 = sshll.u32 %s2237_s15, 4  ;;  %s2480_s23 = scalar_lea.hbm %s2540_s2, %s1204_s17  ;;  %s2482_s27 = int_to_ptr.vmem [resolvable:$true] %s1102_s27 }
  0x60   : > { %v308_v20 = vadd.f32 %v307_v11, %v1695_v9  ;;  %v325_v23 = vadd.f32 %v324_v16, %v1701_v12  ;;  %v1744_v30 = vld [vmem:[%s1660_s3 + $0xa8] sm:$0xff]  ;;  %v1747_v31 = vld [vmem:[%s1660_s3 + $0x60] sm:$0xff]  ;;  %v332_v32 = vadd.f32 %v1734_v26, %v1731_v25  ;;  %v1752_v33 = vld [vmem:[%s1660_s3 + $0xb0] sm:$0xff]  ;;  %s1089_s28 = scalar_lea.sflag [#allocation4], %s1654_s19  ;;  %s1416_s4 = scalar_lea.vmem %s2482_s27, 16384 }
  0x61   : > { %v316_v35 = vadd.f32 %v315_v24, %v1726_v22  ;;  %v1757_v36 = vld [vmem:[%s1660_s3 + $0xd8] sm:$0xff]  ;;  %v1760_v37 = vld [vmem:[%s1660_s3 + $0x100] sm:$0xff]  ;;  %v1764_v39 = vld [vmem:[%s1660_s3 + $0x68] sm:$0xff]  ;;  %p1417_p4 = scmp.ne.s32.totalorder %s2482_s27, %s1416_s4  ;;  %s1497_s5 = smov [#allocation7]  }
  0x62   : > { %v309_v29 = vadd.f32 %v308_v20, %v1710_v15  ;;  %v326_v34 = vadd.f32 %v325_v23, %v1723_v21  ;;  %v333_v40 = vadd.f32 %v332_v32, %v1737_v27  ;;  %v1768_v41 = vld [vmem:[%s1660_s3 + $0x108] sm:$0xff]  ;;  %v1771_v42 = vld [vmem:[%s1660_s3 + $0x110] sm:$0xff]  ;;  %v1774_v43 = vld [vmem:[%s1660_s3 + $0xb8] sm:$0xff]  ;;  %s1420_s6 = sshll.u32 %s1497_s5, 4  ;;  %s1421_s6 = int_to_ptr.vmem [resolvable:$false] %s1420_s6 }
  0x63   : > { %v1778_v45 = vld [vmem:[%s1660_s3 + $0x70] sm:$0xff]  ;;  %v317_v46 = vadd.f32 %v316_v35, %v1747_v31  ;;  %v1782_v47 = vld [vmem:[%s1660_s3 + $0xe0] sm:$0xff]  ;;  %v341_v48 = vadd.f32 %v1768_v41, %v1760_v37  ;;  %v1789_v51 = vld [vmem:[%s1660_s3 + $0x118] sm:$0xff]  ;;  %p1418_p6 = pnand %p1417_p4, %p1606_p12  ;;  %s1422_s7 = scalar_lea.vmem %s1421_s6, 32768 }
  0x64   : > { %v310_v38 = vadd.f32 %v309_v29, %v1719_v19  ;;  %v327_v44 = vadd.f32 %v326_v34, %v1744_v30  ;;  %v334_v50 = vadd.f32 %v333_v40, %v1757_v36  ;;  %v1792_v52 = vld [vmem:[%s1660_s3 + $0x140] sm:$0xff]  ;;  %v1795_v53 = vld [vmem:[%s1660_s3 + $0x148] sm:$0xff]  ;;  %v1799_v55 = vld [vmem:[%s1660_s3 + $0x78] sm:$0xff]  ;;  %p1423_p10 = scmp.lt.s32.totalorder %s2482_s27, %s1421_s6  ;;  %p1424_p13 = scmp.lt.s32.totalorder %s1422_s7, %s1416_s4 }
  0x65   : > { %2647 = vst [vmem:[#allocation11_spill] sm:$0xff] %v1792_v52  ;;  %2648 = vst [vmem:[#allocation12_spill] sm:$0xff] %v1795_v53  ;;  %v318_v56 = vadd.f32 %v317_v46, %v1764_v39  ;;  %v1803_v57 = vld [vmem:[%s1660_s3 + $0xe8] sm:$0xff]  ;;  %v342_v58 = vadd.f32 %v341_v48, %v1771_v42  ;;  %v1807_v59 = vld [vmem:[%s1660_s3 + $0x150] sm:$0xff]  ;;  %v350_v60 = vadd.f32 %v1795_v53, %v1792_v52  ;;  %p1419_p8 = pneg %p1418_p6 }
  0x66   : > { %v311_v49 = vadd.f32 %v310_v38, %v1740_v28  ;;  %v328_v54 = vadd.f32 %v327_v44, %v1752_v33  ;;  %2649 = vst [vmem:[#allocation13_spill] sm:$0xff] %v1807_v59  ;;  %v1812_v61 = vld [vmem:[%s1660_s3 + $0xf0] sm:$0xff]  ;;  %v335_v62 = vadd.f32 %v334_v50, %v1782_v47  ;;  %v1816_v63 = vld [vmem:[%s1660_s3 + $0x120] sm:$0xff]  ;;  %v1819_v3 = vld [vmem:[%s1660_s3 + $0x158] sm:$0xff]  ;;  %p1425_p3 = por %p1424_p13, %p1423_p10 }
  0x67   : > { %2650 = vst [vmem:[#allocation14_spill] sm:$0xff] %v1812_v61  ;;  %2651 = vst [vmem:[#allocation15_spill] sm:$0xff] %v1819_v3  ;;  %v319_v10 = vadd.f32 %v318_v56, %v1778_v45  ;;  %v343_v11 = vadd.f32 %v342_v58, %v1789_v51  ;;  %v351_v16 = vadd.f32 %v350_v60, %v1807_v59  ;;  %v1826_v18 = vld [vmem:[%s1660_s3 + $0x180] sm:$0xff]  ;;  %v1829_v20 = vld [vmem:[%s1660_s3 + $0x188] sm:$0xff] }
  0x68   : > { %312 = vadd.xlane.f32.xlu0 %v311_v49  ;;  %v329_v6 = vadd.f32 %v328_v54, %v1774_v43  ;;  %2652 = vst [vmem:[#allocation16_spill] sm:$0xff] %v1826_v18  ;;  %2653 = vst [vmem:[#allocation17_spill] sm:$0xff] %v1829_v20  ;;  %v1832_v23 = vld [vmem:[%s1660_s3 + $0x190] sm:$0xff]  ;;  %v1835_v24 = vld [vmem:[%s1660_s3 + $0xf8] sm:$0xff]  ;;  %v336_v29 = vadd.f32 %v335_v62, %v1803_v57  ;;  %v359_v35 = vadd.f32 %v1829_v20, %v1826_v18  ;;  %p1426_p7 = pnand %p1425_p3, %p1419_p8 }
  0x69   : > { %2654 = vst [vmem:[#allocation18_spill] sm:$0xff] %v1832_v23  ;;  %2655 = vst [vmem:[#allocation19_spill] sm:$0xff] %v1835_v24  ;;  %v1839_v32 = vld [vmem:[%s1660_s3 + $0x128] sm:$0xff]  ;;  %v1842_v34 = vld [vmem:[%s1660_s3 + $0x160] sm:$0xff]  ;;  %v320_v38 = vadd.f32 %v319_v10, %v1799_v55  ;;  %v344_v44 = vadd.f32 %v343_v11, %v1816_v63  ;;  %v352_v46 = vadd.f32 %v351_v16, %v1819_v3 }
  0x6a   : > { %2656 = vst [vmem:[#allocation20_spill] sm:$0xff] %v1842_v34  ;;  %330 = vadd.xlane.f32.xlu1 %v329_v6  ;;  %v1848_v40 = vld [vmem:[%s1660_s3 + $0x130] sm:$0xff]  ;;  %v1853_v48 = vld [vmem:[%s1660_s3 + $0x198] sm:$0xff]  ;;  %v1856_v49 = vld [vmem:[%s1660_s3 + $0x1c0] sm:$0xff]  ;;  %v337_v50 = vadd.f32 %v336_v29, %v1812_v61  ;;  %v360_v56 = vadd.f32 %v359_v35, %v1832_v23 }
  0x6b   : > { %2657 = vst [vmem:[#allocation21_spill] sm:$0xff] %v1853_v48  ;;  %2658 = vst [vmem:[#allocation22_spill] sm:$0xff] %v1856_v49  ;;  %v1860_v54 = vld [vmem:[%s1660_s3 + $0x168] sm:$0xff]  ;;  %v1867_v60 = vld [vmem:[%s1660_s3 + $0x1d0] sm:$0xff]  ;;  %v345_v6 = vadd.f32 %v344_v44, %v1839_v32  ;;  %v353_v11 = vadd.f32 %v352_v46, %v1842_v34 }
  0x6c   : > { %2659 = vst [vmem:[#allocation23_spill] sm:$0xff] %v1860_v54  ;;  %v1864_v58 = vld [vmem:[%s1660_s3 + $0x1c8] sm:$0xff]  ;;  %2661 = vst [vmem:[#allocation25_spill] sm:$0xff] %v1867_v60  ;;  %321 = vadd.xlane.f32.xlu0 %v320_v38  ;;  %v1870_v62 = vld [vmem:[%s1660_s3 + $0x138] sm:$0xff]  ;;  %v338_v35 = vadd.f32 %v337_v50, %v1835_v24  ;;  %v361_v38 = vadd.f32 %v360_v56, %v1853_v48 }
  0x6d   : > { %2660 = vst [vmem:[#allocation24_spill] sm:$0xff] %v1864_v58  ;;  %v1874_v10 = vld [vmem:[%s1660_s3 + $0x170] sm:$0xff]  ;;  %v1878_v16 = vld [vmem:[%s1660_s3 + $0x1a0] sm:$0xff]  ;;  %v368_v29 = vadd.f32 %v1864_v58, %v1856_v49  ;;  %v1885_v3 = vld [vmem:[%s1660_s3 + $0x1d8] sm:$0xff]  ;;  %v346_v46 = vadd.f32 %v345_v6, %v1848_v40  ;;  %v354_v58 = vadd.f32 %v353_v11, %v1860_v54 }
  0x6e   : > { %2662 = vst [vmem:[#allocation26_spill] sm:$0xff] %v1874_v10  ;;  %2663 = vst [vmem:[#allocation27_spill] sm:$0xff] %v1878_v16  ;;  %v1888_v59 = vld [vmem:[%s1660_s3 + $0x200] sm:$0xff]  ;;  %v1891_v44 = vld [vmem:[%s1660_s3 + $0x208] sm:$0xff]  ;;  %339 = vadd.xlane.f32.xlu1 %v338_v35  ;;  %v362_v52 = vadd.f32 %v361_v38, %v1878_v16 }
  0x6f   : > { %2664 = vst [vmem:[#allocation28_spill] sm:$0xff] %v1885_v3  ;;  %2665 = vst [vmem:[#allocation29_spill] sm:$0xff] %v1888_v59  ;;  %v1895_v34 = vld [vmem:[%s1660_s3 + $0x178] sm:$0xff]  ;;  %v1899_v49 = vld [vmem:[%s1660_s3 + $0x1a8] sm:$0xff]  ;;  %v369_v50 = vadd.f32 %v368_v29, %v1867_v60  ;;  %v377_v53 = vadd.f32 %v1891_v44, %v1888_v59  ;;  %v347_v54 = vadd.f32 %v346_v46, %v1870_v62 }
  0x70   : > { %2666 = vst [vmem:[#allocation30_spill] sm:$0xff] %v1891_v44  ;;  %2667 = vst [vmem:[#allocation31_spill] sm:$0xff] %v1895_v34  ;;  %v1903_v56 = vld [vmem:[%s1660_s3 + $0x210] sm:$0xff]  ;;  %v1912_v48 = vld [vmem:[%s1660_s3 + $0x1e0] sm:$0xff]  ;;  %v355_v29 = vadd.f32 %v354_v58, %v1874_v10  ;;  %v363_v46 = vadd.f32 %v362_v52, %v1899_v49 }
  0x71   : > { %2668 = vst [vmem:[#allocation32_spill] sm:$0xff] %v1899_v49  ;;  %2669 = vst [vmem:[#allocation33_spill] sm:$0xff] %v1903_v56  ;;  %v1908_v6 = vld [vmem:[%s1660_s3 + $0x1b0] sm:$0xff]  ;;  %v1915_v11 = vld [vmem:[%s1660_s3 + $0x218] sm:$0xff]  ;;  %v370_v60 = vadd.f32 %v369_v50, %v1885_v3  ;;  %v378_v44 = vadd.f32 %v377_v53, %v1903_v56  ;;  %348 = vadd.xlane.f32.xlu0 %v347_v54 }
  0x72   : > { %2670 = vst [vmem:[#allocation34_spill] sm:$0xff] %v1908_v6  ;;  %2671 = vst [vmem:[#allocation35_spill] sm:$0xff] %v1912_v48  ;;  %v1922_v35 = vld [vmem:[%s1660_s3 + $0x240] sm:$0xff]  ;;  %v1925_v59 = vld [vmem:[%s1660_s3 + $0x248] sm:$0xff]  ;;  %v356_v3 = vadd.f32 %v355_v29, %v1895_v34  ;;  %v364_v20 = vadd.f32 %v363_v46, %v1908_v6 }
  0x73   : > { %2672 = vst [vmem:[#allocation36_spill] sm:$0xff] %v1915_v11  ;;  %2673 = vst [vmem:[#allocation37_spill] sm:$0xff] %v1922_v35  ;;  %v1928_v38 = vld [vmem:[%s1660_s3 + $0x250] sm:$0xff]  ;;  %v1931_v16 = vld [vmem:[%s1660_s3 + $0x1b8] sm:$0xff]  ;;  %v386_v53 = vadd.f32 %v1925_v59, %v1922_v35  ;;  %v371_v10 = vadd.f32 %v370_v60, %v1912_v48  ;;  %v379_v23 = vadd.f32 %v378_v44, %v1915_v11 }
  0x74   : > { %2674 = vst [vmem:[#allocation38_spill] sm:$0xff] %v1925_v59  ;;  %2675 = vst [vmem:[#allocation39_spill] sm:$0xff] %v1928_v38  ;;  %v1935_v58 = vld [vmem:[%s1660_s3 + $0x1e8] sm:$0xff]  ;;  %v1938_v50 = vld [vmem:[%s1660_s3 + $0x220] sm:$0xff]  ;;  %357 = vadd.xlane.f32.xlu1 %v356_v3 }
  0x75   : > { %2676 = vst [vmem:[#allocation40_spill] sm:$0xff] %v1931_v16  ;;  %2677 = vst [vmem:[#allocation41_spill] sm:$0xff] %v1935_v58  ;;  %v1944_v56 = vld [vmem:[%s1660_s3 + $0x1f0] sm:$0xff]  ;;  %v1949_v52 = vld [vmem:[%s1660_s3 + $0x258] sm:$0xff]  ;;  %v387_v54 = vadd.f32 %v386_v53, %v1928_v38  ;;  %v372_v44 = vadd.f32 %v371_v10, %v1935_v58  ;;  %v380_v46 = vadd.f32 %v379_v23, %v1938_v50 }
  0x76   : > { %2678 = vst [vmem:[#allocation42_spill] sm:$0xff] %v1938_v50  ;;  %2679 = vst [vmem:[#allocation43_spill] sm:$0xff] %v1944_v56  ;;  %v1952_v49 = vld [vmem:[%s1660_s3 + $0x280] sm:$0xff]  ;;  %v1956_v59 = vld [vmem:[%s1660_s3 + $0x228] sm:$0xff]  ;;  %v365_v38 = vadd.f32 %v364_v20, %v1931_v16 }
  0x77   : > { %2680 = vst [vmem:[#allocation44_spill] sm:$0xff] %v1949_v52  ;;  %2681 = vst [vmem:[#allocation45_spill] sm:$0xff] %v1952_v49  ;;  %v1960_v29 = vld [vmem:[%s1660_s3 + $0x288] sm:$0xff]  ;;  %v1963_v35 = vld [vmem:[%s1660_s3 + $0x290] sm:$0xff]  ;;  %v388_v3 = vadd.f32 %v387_v54, %v1949_v52  ;;  %v373_v23 = vadd.f32 %v372_v44, %v1944_v56 }
  0x78   : > { %2682 = vst [vmem:[#allocation46_spill] sm:$0xff] %v1956_v59  ;;  %2683 = vst [vmem:[#allocation47_spill] sm:$0xff] %v1960_v29  ;;  %v1966_v60 = vld [vmem:[%s1660_s3 + $0x1f8] sm:$0xff]  ;;  %v1970_v48 = vld [vmem:[%s1660_s3 + $0x230] sm:$0xff]  ;;  %v395_v53 = vadd.f32 %v1960_v29, %v1952_v49  ;;  %v381_v29 = vadd.f32 %v380_v46, %v1956_v59  ;;  %366 = vadd.xlane.f32.xlu0 %v365_v38 }
  0x79   : > { %2684 = vst [vmem:[#allocation48_spill] sm:$0xff] %v1963_v35  ;;  %2685 = vst [vmem:[#allocation49_spill] sm:$0xff] %v1966_v60  ;;  %v1974_v11 = vld [vmem:[%s1660_s3 + $0x260] sm:$0xff]  ;;  %v1981_v34 = vld [vmem:[%s1660_s3 + $0x298] sm:$0xff]  ;;  %v374_v59 = vadd.f32 %v373_v23, %v1966_v60 }
  0x7a   : > { %2686 = vst [vmem:[#allocation50_spill] sm:$0xff] %v1970_v48  ;;  %2687 = vst [vmem:[#allocation51_spill] sm:$0xff] %v1974_v11  ;;  %v1984_v6 = vld [vmem:[%s1660_s3 + $0x2c0] sm:$0xff]  ;;  %v1987_v10 = vld [vmem:[%s1660_s3 + $0x2c8] sm:$0xff]  ;;  %v396_v20 = vadd.f32 %v395_v53, %v1963_v35  ;;  %v389_v56 = vadd.f32 %v388_v3, %v1974_v11  ;;  %v382_v53 = vadd.f32 %v381_v29, %v1970_v48 }
  0x7b   : > { %2688 = vst [vmem:[#allocation52_spill] sm:$0xff] %v1981_v34  ;;  %2689 = vst [vmem:[#allocation53_spill] sm:$0xff] %v1984_v6  ;;  %v1991_v58 = vld [vmem:[%s1660_s3 + $0x238] sm:$0xff]  ;;  %v1995_v49 = vld [vmem:[%s1660_s3 + $0x268] sm:$0xff]  ;;  %v404_v52 = vadd.f32 %v1987_v10, %v1984_v6  ;;  %375 = vadd.xlane.f32.xlu1 %v374_v59 }
  0x7c   : > { %2690 = vst [vmem:[#allocation54_spill] sm:$0xff] %v1987_v10  ;;  %2691 = vst [vmem:[#allocation55_spill] sm:$0xff] %v1991_v58  ;;  %v1999_v54 = vld [vmem:[%s1660_s3 + $0x2d0] sm:$0xff]  ;;  %v2008_v50 = vld [vmem:[%s1660_s3 + $0x2a0] sm:$0xff]  ;;  %v397_v35 = vadd.f32 %v396_v20, %v1981_v34  ;;  %v390_v23 = vadd.f32 %v389_v56, %v1995_v49  ;;  %v383_v20 = vadd.f32 %v382_v53, %v1991_v58 }
  0x7d   : > { %2692 = vst [vmem:[#allocation56_spill] sm:$0xff] %v1995_v49  ;;  %2693 = vst [vmem:[#allocation57_spill] sm:$0xff] %v1999_v54  ;;  %v2004_v44 = vld [vmem:[%s1660_s3 + $0x270] sm:$0xff]  ;;  %v2011_v46 = vld [vmem:[%s1660_s3 + $0x2d8] sm:$0xff]  ;;  %v405_v10 = vadd.f32 %v404_v52, %v1999_v54 }
  0x7e   : > { %2694 = vst [vmem:[#allocation58_spill] sm:$0xff] %v2004_v44  ;;  %2695 = vst [vmem:[#allocation59_spill] sm:$0xff] %v2008_v50  ;;  %v2018_v38 = vld [vmem:[%s1660_s3 + $0x300] sm:$0xff]  ;;  %v2021_v6 = vld [vmem:[%s1660_s3 + $0x308] sm:$0xff]  ;;  %v398_v34 = vadd.f32 %v397_v35, %v2008_v50  ;;  %v391_v16 = vadd.f32 %v390_v23, %v2004_v44  ;;  %v2592_v35 = vmov 0.0|0.0   ;;  %384 = vadd.xlane.f32.xlu0 %v383_v20 }
  0x7f   : > { %2696 = vst [vmem:[#allocation60_spill] sm:$0xff] %v2011_v46  ;;  %2697 = vst [vmem:[#allocation61_spill] sm:$0xff] %v2018_v38  ;;  %v2024_v3 = vld [vmem:[%s1660_s3 + $0x310] sm:$0xff]  ;;  %v2027_v11 = vld [vmem:[%s1660_s3 + $0x278] sm:$0xff]  ;;  %v413_v52 = vadd.f32 %v2021_v6, %v2018_v38  ;;  %v406_v48 = vadd.f32 %v405_v10, %v2011_v46  ;;  %1264 = vmatprep.subr.bf16.mxu0 %v2592_v35 }
  0x80   : > { %2698 = vst [vmem:[#allocation62_spill] sm:$0xff] %v2021_v6  ;;  %2699 = vst [vmem:[#allocation63_spill] sm:$0xff] %v2024_v3  ;;  %v2031_v29 = vld [vmem:[%s1660_s3 + $0x2a8] sm:$0xff]  ;;  %v2034_v60 = vld [vmem:[%s1660_s3 + $0x2e0] sm:$0xff]  ;;  %v392_v35 = vadd.f32 %v391_v16, %v2027_v11 }
  0x81   : > { %2700 = vst [vmem:[#allocation64_spill] sm:$0xff] %v2027_v11  ;;  %2701 = vst [vmem:[#allocation65_spill] sm:$0xff] %v2031_v29  ;;  %v2040_v54 = vld [vmem:[%s1660_s3 + $0x2b0] sm:$0xff]  ;;  %v2045_v56 = vld [vmem:[%s1660_s3 + $0x318] sm:$0xff]  ;;  %v414_v59 = vadd.f32 %v413_v52, %v2024_v3  ;;  %v399_v23 = vadd.f32 %v398_v34, %v2031_v29  ;;  %v407_v52 = vadd.f32 %v406_v48, %v2034_v60 }
  0x82   : > { %2702 = vst [vmem:[#allocation66_spill] sm:$0xff] %v2034_v60  ;;  %2703 = vst [vmem:[#allocation67_spill] sm:$0xff] %v2040_v54  ;;  %v2048_v49 = vld [vmem:[%s1660_s3 + $0x340] sm:$0xff]  ;;  %v2052_v6 = vld [vmem:[%s1660_s3 + $0x2e8] sm:$0xff]  ;;  %393 = vadd.xlane.f32.xlu1 %v392_v35 }
  0x83   : > { %2704 = vst [vmem:[#allocation68_spill] sm:$0xff] %v2045_v56  ;;  %2705 = vst [vmem:[#allocation69_spill] sm:$0xff] %v2048_v49  ;;  %v2056_v53 = vld [vmem:[%s1660_s3 + $0x348] sm:$0xff]  ;;  %v2059_v38 = vld [vmem:[%s1660_s3 + $0x350] sm:$0xff]  ;;  %v415_v20 = vadd.f32 %v414_v59, %v2045_v56  ;;  %v400_v48 = vadd.f32 %v399_v23, %v2040_v54 }
  0x84   : > { %2706 = vst [vmem:[#allocation70_spill] sm:$0xff] %v2052_v6  ;;  %2707 = vst [vmem:[#allocation71_spill] sm:$0xff] %v2056_v53  ;;  %v2063_v10 = vld [vmem:[%s1660_s3 + $0x2b8] sm:$0xff]  ;;  %v2067_v46 = vld [vmem:[%s1660_s3 + $0x2f0] sm:$0xff]  ;;  %v422_v44 = vadd.f32 %v2056_v53, %v2048_v49  ;;  %v408_v53 = vadd.f32 %v407_v52, %v2052_v6 }
  0x85   : > { %2708 = vst [vmem:[#allocation72_spill] sm:$0xff] %v2059_v38  ;;  %2709 = vst [vmem:[#allocation73_spill] sm:$0xff] %v2063_v10  ;;  %v2071_v3 = vld [vmem:[%s1660_s3 + $0x320] sm:$0xff]  ;;  %v2078_v50 = vld [vmem:[%s1660_s3 + $0x358] sm:$0xff]  ;;  %v401_v54 = vadd.f32 %v400_v48, %v2063_v10 }
  0x86   : > { %2710 = vst [vmem:[#allocation74_spill] sm:$0xff] %v2067_v46  ;;  %2711 = vst [vmem:[#allocation75_spill] sm:$0xff] %v2071_v3  ;;  %v2081_v58 = vld [vmem:[%s1660_s3 + $0x380] sm:$0xff]  ;;  %v2084_v34 = vld [vmem:[%s1660_s3 + $0x388] sm:$0xff]  ;;  %v423_v16 = vadd.f32 %v422_v44, %v2059_v38  ;;  %v416_v11 = vadd.f32 %v415_v20, %v2071_v3  ;;  %v409_v44 = vadd.f32 %v408_v53, %v2067_v46 }
  0x87   : > { %2712 = vst [vmem:[#allocation76_spill] sm:$0xff] %v2078_v50  ;;  %2713 = vst [vmem:[#allocation77_spill] sm:$0xff] %v2081_v58  ;;  %v2088_v60 = vld [vmem:[%s1660_s3 + $0x2f8] sm:$0xff]  ;;  %v2092_v49 = vld [vmem:[%s1660_s3 + $0x328] sm:$0xff]  ;;  %v431_v56 = vadd.f32 %v2084_v34, %v2081_v58  ;;  %402 = vadd.xlane.f32.xlu0 %v401_v54 }
  0x88   : > { %2714 = vst [vmem:[#allocation78_spill] sm:$0xff] %v2084_v34  ;;  %2715 = vst [vmem:[#allocation79_spill] sm:$0xff] %v2088_v60  ;;  %v2096_v59 = vld [vmem:[%s1660_s3 + $0x390] sm:$0xff]  ;;  %v2105_v52 = vld [vmem:[%s1660_s3 + $0x360] sm:$0xff]  ;;  %v424_v34 = vadd.f32 %v423_v16, %v2078_v50  ;;  %v417_v3 = vadd.f32 %v416_v11, %v2092_v49 }
  0x89   : > { %2716 = vst [vmem:[#allocation80_spill] sm:$0xff] %v2092_v49  ;;  %2717 = vst [vmem:[#allocation81_spill] sm:$0xff] %v2096_v59  ;;  %v2101_v23 = vld [vmem:[%s1660_s3 + $0x330] sm:$0xff]  ;;  %v2108_v6 = vld [vmem:[%s1660_s3 + $0x398] sm:$0xff]  ;;  %v432_v35 = vadd.f32 %v431_v56, %v2096_v59  ;;  %v410_v56 = vadd.f32 %v409_v44, %v2088_v60 }
  0x8a   : > { %2718 = vst [vmem:[#allocation82_spill] sm:$0xff] %v2101_v23  ;;  %2719 = vst [vmem:[#allocation83_spill] sm:$0xff] %v2105_v52  ;;  %v2113_v38 = vld [vmem:[%s1660_s3 + $0x338] sm:$0xff]  ;;  %v2118_v58 = vld [vmem:[%s1660_s3 + $0x3c0] sm:$0xff]  ;;  %v425_v16 = vadd.f32 %v424_v34, %v2105_v52  ;;  %v418_v10 = vadd.f32 %v417_v3, %v2101_v23 }
  0x8b   : > { %2720 = vst [vmem:[#allocation84_spill] sm:$0xff] %v2108_v6  ;;  %2721 = vst [vmem:[#allocation85_spill] sm:$0xff] %v2113_v38  ;;  %v2121_v29 = vld [vmem:[%s1660_s3 + $0x3c8] sm:$0xff]  ;;  %v2124_v20 = vld [vmem:[%s1660_s3 + $0x3d0] sm:$0xff]  ;;  %v433_v11 = vadd.f32 %v432_v35, %v2108_v6  ;;  %411 = vadd.xlane.f32.xlu1 %v410_v56 }
  0x8c   : > { %2722 = vst [vmem:[#allocation86_spill] sm:$0xff] %v2118_v58  ;;  %2723 = vst [vmem:[#allocation87_spill] sm:$0xff] %v2121_v29  ;;  %v2128_v18 = vld [vmem:[%s1660_s3 + $0x368] sm:$0xff]  ;;  %v2131_v48 = vld [vmem:[%s1660_s3 + $0x370] sm:$0xff]  ;;  %v440_v46 = vadd.f32 %v2121_v29, %v2118_v58  ;;  %v419_v6 = vadd.f32 %v418_v10, %v2113_v38  ;;  %v2735_v10 = vmov 0.0|0.0  }
  0x8d   : > { %2724 = vst [vmem:[#allocation88_spill] sm:$0xff] %v2124_v20  ;;  %2725 = vst [vmem:[#allocation89_spill] sm:$0xff] %v2128_v18  ;;  %v2134_v53 = vld [vmem:[%s1660_s3 + $0x3a0] sm:$0xff]  ;;  %v2141_v50 = vld [vmem:[%s1660_s3 + $0x3a8] sm:$0xff]  ;;  %v426_v34 = vadd.f32 %v425_v16, %v2128_v18 }
  0x8e   : > { %2726 = vst [vmem:[#allocation90_spill] sm:$0xff] %v2131_v48  ;;  %2727 = vst [vmem:[#allocation91_spill] sm:$0xff] %v2134_v53  ;;  %v2145_v59 = vld [vmem:[%s1660_s3 + $0x3d8] sm:$0xff]  ;;  %v465_v49 = vld [vmem:[#allocation5] sm:$0xff]  ;;  %v441_v29 = vadd.f32 %v440_v46, %v2124_v20  ;;  %v434_v44 = vadd.f32 %v433_v11, %v2134_v53  ;;  %420 = vadd.xlane.f32.xlu0 %v419_v6 }
  0x8f   : > { %2728 = vst [vmem:[#allocation92_spill] sm:$0xff] %v2141_v50  ;;  %2729 = vst [vmem:[#allocation93_spill] sm:$0xff] %v2145_v59  ;;  %v466_v58 = vld [vmem:[#allocation5 + $0x8] sm:$0xff]  ;;  %v467_v54 = vld [vmem:[#allocation5 + $0x10] sm:$0xff]  ;;  %v427_v20 = vadd.f32 %v426_v34, %v2131_v48 }
  0x90   : > { %v468_v24 = vld [vmem:[#allocation5 + $0x18] sm:$0xff]  ;;  %v2152_v52 = vld [vmem:[%s1660_s3 + $0x3e0] sm:$0xff]  ;;  %v1265_v35 = vpack.c.bf16 %v466_v58, %v465_v49  ;;  %v2159_v3 = vld [vmem:[%s1660_s3 + $0x3b0] sm:$0xff]  ;;  %v442_v46 = vadd.f32 %v441_v29, %v2145_v59  ;;  %v435_v56 = vadd.f32 %v434_v44, %v2141_v50 }
  0x91   : > { %2730 = vst [vmem:[#allocation94_spill] sm:$0xff] %v2152_v52  ;;  %v2156_v60 = vld [vmem:[%s1660_s3 + $0x378] sm:$0xff]  ;;  %2732 = vst [vmem:[#allocation96_spill] sm:$0xff] %v2159_v3  ;;  %v2165_v16 = vld [vmem:[%s1660_s3 + $0x3e8] sm:$0xff]  ;;  %v1268_v11 = vpack.c.bf16 %v468_v24, %v467_v54 }
  0x92   : > { %2731 = vst [vmem:[#allocation95_spill] sm:$0xff] %v2156_v60  ;;  %2733 = vst [vmem:[#allocation97_spill] sm:$0xff] %v2165_v16  ;;  %1266 = vmatpush3.bf16.msra.mxu0 %v1265_v35  ;;  %v2168_v49 = vld [vmem:[%s1660_s3 + $0x3b8] sm:$0xff]  ;;  %v443_v58 = vadd.f32 %v442_v46, %v2152_v52  ;;  %v469_v18 = vld [vmem:[#allocation5 + $0x20] sm:$0xff]  ;;  %v428_v29 = vadd.f32 %v427_v20, %v2156_v60  ;;  %v436_v34 = vadd.f32 %v435_v56, %v2159_v3 }
  0x93   : > { %2734 = vst [vmem:[#allocation98_spill] sm:$0xff] %v2168_v49  ;;  %1267 = vmatprep.subr.bf16.mxu0 %v2735_v10  ;;  %v470_v53 = vld [vmem:[#allocation5 + $0x28] sm:$0xff]  ;;  %v2175_v59 = vld [vmem:[%s1660_s3 + $0x3f0] sm:$0xff]  ;;  %v2180_v6 = vld [vmem:[%s1660_s3 + $0x3f8] sm:$0xff] }
  0x94   : > { %2736 = vst [vmem:[#allocation99_spill] sm:$0xff] %v2175_v59  ;;  %v444_v44 = vadd.f32 %v443_v58, %v2165_v16  ;;  %429 = vadd.xlane.f32.xlu1 %v428_v29  ;;  %v437_v24 = vadd.f32 %v436_v34, %v2168_v49  ;;  %2737 = vst [vmem:[#allocation100_spill] sm:$0xff] %v2180_v6  ;;  %v1271_v54 = vpack.c.bf16 %v470_v53, %v469_v18  ;;  %v471_v46 = vld [vmem:[#allocation5 + $0x30] sm:$0xff]  ;;  %v472_v20 = vld [vmem:[#allocation5 + $0x38] sm:$0xff] }
  0x95   : > { %v1274_v52 = vpack.c.bf16 %v472_v20, %v471_v46  ;;  %v473_v58 = vld [vmem:[#allocation5 + $0x40] sm:$0xff]  ;;  %v474_v29 = vld [vmem:[#allocation5 + $0x48] sm:$0xff]  ;;  %v475_v18 = vld [vmem:[#allocation5 + $0x50] sm:$0xff] }
  0x96   : > { %1269 = vmatpush3.bf16.msra.mxu0 %v1268_v11  ;;  %v445_v35 = vadd.f32 %v444_v44, %v2175_v59  ;;  %438 = vadd.xlane.f32.xlu0 %v437_v24  ;;  %v1277_v34 = vpack.c.bf16 %v474_v29, %v473_v58  ;;  %v476_v53 = vld [vmem:[#allocation5 + $0x58] sm:$0xff]  ;;  %v477_v44 = vld [vmem:[#allocation5 + $0x60] sm:$0xff]  ;;  %v478_v24 = vld [vmem:[#allocation5 + $0x68] sm:$0xff] }
  0x97   : > { %1270 = vmatprep.subr.bf16.mxu0 %v2735_v10  ;;  %v1280_v11 = vpack.c.bf16 %v476_v53, %v475_v18  ;;  %v480_v46 = vld [vmem:[#allocation5 + $0x78] sm:$0xff] }
  0x98   : > { %v446_v56 = vadd.f32 %v445_v35, %v2180_v6  ;;  %v479_v35 = vld [vmem:[#allocation5 + $0x70] sm:$0xff] }
  0x99   : > { %v1286_v20 = vpack.c.bf16 %v480_v46, %v479_v35 }
  0x9a   : > { %1272 = vmatpush3.bf16.msra.mxu0 %v1271_v54  ;;  %447 = vadd.xlane.f32.xlu1 %v446_v56  ;;  %v1283_v54 = vpack.c.bf16 %v478_v24, %v477_v44  ;;  %v499_v56 = vlaneseq }
  0x9b   : > { %1273 = vmatprep.subr.bf16.mxu0 %v2735_v10 }
  0x9c   : > { %v2190_v58 = vand.u32 127, %v499_v56  ;;  %v2193_v18 = vshrl.u32 %v499_v56, 7 }
  0x9e   : > { %1275 = vmatpush3.bf16.msra.mxu0 %v1274_v52  ;;  %v1496_v52 = vmov 0.0   ;;  %v519_v46 = vadd.s32 4294967272, %v2190_v58  ;;  %v526_v56 = vadd.s32 4294967264, %v2190_v58  ;;  %v533_v49 = vadd.s32 4294967256, %v2190_v58 }
  0x9f   : > { %1276 = vmatprep.subr.bf16.mxu0 %v2735_v10  ;;  %1256 = vmatprep.mubr.msk.f32.mxu0 %vm1495_vm0, %v1496_v52 }
  0xa0   : > { %1259 = vmatprep.subr.mxu1 %v1496_v52  ;;  %1261 = vmatprep.mubr.msk.f32.mxu1 %vm1495_vm0, %v1496_v52  ;;  %v529_v50 = vsub.s32 %v526_v56, %v2193_v18  ;;  %vm685_vm0 = vcmask 64512  }
  0xa2   : > { %1278 = vmatpush3.bf16.msra.mxu0 %v1277_v34  ;;  %v505_v34 = vadd.s32 4294967288, %v2190_v58 }
  0xa3   : > { %1279 = vmatprep.subr.bf16.mxu0 %v2735_v10 }
  0xa6   : > { %1281 = vmatpush3.bf16.msra.mxu0 %v1280_v11  ;;  %v508_v11 = vsub.s32 %v505_v34, %v2193_v18  ;;  %v522_v34 = vsub.s32 %v519_v46, %v2193_v18  ;;  %v547_v46 = vadd.s32 4294967240, %v2190_v58 }
  0xa7   : > { %1282 = vmatprep.subr.bf16.mxu0 %v2735_v10 }
  0xaa   : > { %1284 = vmatpush3.bf16.msra.mxu0 %v1283_v54  ;;  %v503_v54 = vsub.s32 %v2190_v58, %v2193_v18 }
  0xab   : > { %1285 = vmatprep.subr.bf16.mxu0 %v2735_v10  ;;  %v512_v10 = vadd.s32 4294967280, %v2190_v58 }
  0xad   : > { %v515_v6 = vsub.s32 %v512_v10, %v2193_v18  ;;  %v540_v10 = vadd.s32 4294967248, %v2190_v58 }
  0xae   : > { %1287 = vmatpush3.bf16.msra.mxu0 %v1286_v20 }
  0xf5   : > { %v313_v29 = vpop.xlane.xlu0 %312 }
  0xf6   : > { %v449_v35 = vmul.f32 0.0009765625, %v313_v29 }
  0xf7   : > { %v331_v53 = vpop.xlane.xlu1 %330 }
  0xf8   : > { %v451_v59 = vmul.f32 0.0009765625, %v331_v53  ;;  %v504_v16 = vrot.slane %v449_v35, %v503_v54  ;;  %v536_v54 = vsub.s32 %v533_v49, %v2193_v18 }
  0xf9   : > { %v322_v44 = vpop.xlane.xlu0 %321 }
  0xfa   : > { %v450_v24 = vmul.f32 0.0009765625, %v322_v44  ;;  %v516_v3 = vrot.slane %v451_v59, %v515_v6 }
  0xfb   : > { %v340_v20 = vpop.xlane.xlu1 %339 }
  0xfc   : > { %v509_v52 = vrot.slane %v450_v24, %v508_v11  ;;  %v452_v60 = vmul.f32 0.0009765625, %v340_v20 }
  0xfe   : > { %v349_v48 = vpop.xlane.xlu0 %348  ;;  %v511_v44 = vsel %vm510_vm1, %v509_v52, %v504_v16  ;;  %v523_v53 = vrot.slane %v452_v60, %v522_v34  ;;  %v554_v16 = vadd.s32 4294967232, %v2190_v58  ;;  %v543_v52 = vsub.s32 %v540_v10, %v2193_v18 }
  0xff   : > { %v453_v11 = vmul.f32 0.0009765625, %v349_v48  ;;  %v518_v24 = vsel %vm517_vm2, %v516_v3, %v511_v44  ;;  %v561_v60 = vadd.s32 4294967224, %v2190_v58  ;;  %v550_v3 = vsub.s32 %v547_v46, %v2193_v18 }
 0x100   : > { %v525_v6 = vsel %vm524_vm3, %v523_v53, %v518_v24  ;;  %v557_v49 = vsub.s32 %v554_v16, %v2193_v18 }
 0x101   : > { %v358_v29 = vpop.xlane.xlu1 %357  ;;  %v530_v20 = vrot.slane %v453_v11, %v529_v50  ;;  %v568_v50 = vadd.s32 4294967216, %v2190_v58 }
 0x102   : > { %v454_v35 = vmul.f32 0.0009765625, %v358_v29 }
 0x103   : > { %v532_v29 = vsel %vm531_vm4, %v530_v20, %v525_v6  ;;  %v571_v16 = vsub.s32 %v568_v50, %v2193_v18 }
 0x104   : > { %v537_v56 = vrot.slane %v454_v35, %v536_v54  ;;  %v575_v54 = vadd.s32 4294967208, %v2190_v58 }
 0x105   : > { %v367_v38 = vpop.xlane.xlu0 %366 }
 0x106   : > { %v455_v59 = vmul.f32 0.0009765625, %v367_v38  ;;  %v564_v38 = vsub.s32 %v561_v60, %v2193_v18  ;;  %v539_v10 = vsel %vm538_vm5, %v537_v56, %v532_v29  ;;  %v578_v60 = vsub.s32 %v575_v54, %v2193_v18 }
 0x107   : > { %v596_v29 = vadd.s32 4294967184, %v2190_v58 }
 0x108   : > { %v376_v48 = vpop.xlane.xlu1 %375  ;;  %v544_v23 = vrot.slane %v455_v59, %v543_v52  ;;  %v582_v52 = vadd.s32 4294967200, %v2190_v58 }
 0x109   : > { %v456_v34 = vmul.f32 0.0009765625, %v376_v48 }
 0x10a   : > { %v546_v35 = vsel %vm545_vm6, %v544_v23, %v539_v10  ;;  %v589_v23 = vadd.s32 4294967192, %v2190_v58 }
 0x10b   : > { %v385_v44 = vpop.xlane.xlu0 %384  ;;  %v551_v53 = vrot.slane %v456_v34, %v550_v3 }
 0x10c   : > { %v457_v61 = vmul.f32 0.0009765625, %v385_v44 }
 0x10d   : > { %v553_v6 = vsel %vm552_vm7, %v551_v53, %v546_v35  ;;  %v603_v35 = vadd.s32 4294967176, %v2190_v58 }
 0x10e   : > { %v558_v46 = vrot.slane %v457_v61, %v557_v49  ;;  %v585_v61 = vsub.s32 %v582_v52, %v2193_v18 }
 0x10f   : > { %v394_v11 = vpop.xlane.xlu1 %393 }
 0x110   : > { %v458_v24 = vmul.f32 0.0009765625, %v394_v11  ;;  %v560_v3 = vsel %vm559_vm8, %v558_v46, %v553_v6 }
 0x112   : > { %v565_v48 = vrot.slane %v458_v24, %v564_v38  ;;  %v592_v38 = vsub.s32 %v589_v23, %v2193_v18 }
 0x114   : > { %v403_v20 = vpop.xlane.xlu0 %402  ;;  %v567_v50 = vsel %vm566_vm9, %v565_v48, %v560_v3  ;;  %v606_v48 = vsub.s32 %v603_v35, %v2193_v18 }
 0x115   : > { %v459_v59 = vmul.f32 0.0009765625, %v403_v20 }
 0x117   : > { %v572_v34 = vrot.slane %v459_v59, %v571_v16  ;;  %v599_v16 = vsub.s32 %v596_v29, %v2193_v18  ;;  %v482_v29 = vld [vmem:[#allocation5 + $0x88] sm:$0x3] }
 0x118   : > { %v412_v56 = vpop.xlane.xlu1 %411 }
 0x119   : > { %v460_v44 = vmul.f32 0.0009765625, %v412_v56  ;;  %v574_v53 = vsel %vm573_vm10, %v572_v34, %v567_v50 }
 0x11b   : > { %v421_v49 = vpop.xlane.xlu0 %420  ;;  %v579_v11 = vrot.slane %v460_v44, %v578_v60 }
 0x11c   : > { %v461_v10 = vmul.f32 0.0009765625, %v421_v49  ;;  %v481_v49 = vld [vmem:[#allocation5 + $0x80] sm:$0xff] }
 0x11d   : > { %v581_v20 = vsel %vm580_vm11, %v579_v11, %v574_v53  ;;  %1260 = vmatpush3.msra.mxu1 %v481_v49 }
 0x11e   : > { %v586_v24 = vrot.slane %v461_v10, %v585_v61 }
 0x120   : > { %v588_v59 = vsel %vm587_vm12, %v586_v24, %v581_v20 }
 0x121   : > { %v430_v54 = vpop.xlane.xlu1 %429 }
 0x122   : > { %v462_v46 = vmul.f32 0.0009765625, %v430_v54 }
 0x123   : > { %v439_v52 = vpop.xlane.xlu0 %438 }
 0x124   : > { %v593_v6 = vrot.slane %v462_v46, %v592_v38  ;;  %v463_v56 = vmul.f32 0.0009765625, %v439_v52  ;;  %v683_v38 = vrot.slane %v482_v29, 1  ;;  %v767_v52 = vsub.s32 0, %v2193_v18 }
 0x126   : > { %v600_v60 = vrot.slane %v463_v56, %v599_v16  ;;  %v595_v44 = vsel %vm594_vm13, %v593_v6, %v588_v59 }
 0x127   : > { %v448_v3 = vpop.xlane.xlu1 %447 }
 0x128   : > { %v464_v34 = vmul.f32 0.0009765625, %v448_v3  ;;  %v602_v23 = vsel %vm601_vm14, %v600_v60, %v595_v44 }
 0x12a   : > { %v607_v61 = vrot.slane %v464_v34, %v606_v48 }
 0x12c   : > { %v609_v58 = vsel %vm608_vm15, %v607_v61, %v602_v23 }
 0x12d   : > { %1257 = vmatmul.mubr.f32.vlgmr.msra.gmra.mrb[0].mxu0 %v609_v58 }
 0x200   : > { %v677_v50 = vpop.f32.mrb[0].mxu0 }
 0x201   : > { %v678_v11 = vadd.f32 %v677_v50, %v482_v29  ;;  %v1258_v10 = vpop.f32.mrb[1].mxu0  ;;  %v2738_v50 = vld [vmem:[#allocation14_spill] sm:$0xff] }
 0x202   : > { %v2741_v10 = vld [vmem:[#allocation17_spill] sm:$0xff] }
 0x203   : > { %v681_v53 = vmax.f32 %v678_v11, 0.0  ;;  %v2739_v11 = vld [vmem:[#allocation19_spill] sm:$0xff] }
 0x205   : > { %1262 = vmatmul.mubr.msk.f32.vlgmr.msra.gmra.mrb[0].mxu1 %vm685_vm0, %v681_v53 }
 0x2d8   : > { %v755_v24 = vpop.f32.mrb[0].mxu1 }
 0x2d9   : > { %v756_v54 = vadd.f32 %v755_v24, %v683_v38  ;;  %v1263_v35 = vpop.f32.mrb[1].mxu1  ;;  %v2742_v38 = vld [vmem:[#allocation18_spill] sm:$0xff]  ;;  %v2743_v24 = vld [vmem:[#allocation21_spill] sm:$0xff] }
 0x2db   : > { %v1197_v46 = vmul.f32 -1.442695, %v756_v54  ;;  %v2744_v54 = vld [vmem:[#allocation27_spill] sm:$0xff] }
 0x2dd   : > { %1354 = vpow2.f32 %v1197_v46  ;;  %v2745_v46 = vld [vmem:[#allocation32_spill] sm:$0xff] }
 0x2e7   : > { %v1355_v16 = vpop.eup %1354 }
 0x2e8   : > { %v762_v20 = vadd.f32 1.0, %v1355_v16 }
 0x2ea   : > { %1356 = vrcp.f32 %v762_v20  ;;  %v2746_v20 = vld [vmem:[#allocation34_spill] sm:$0xff] }
 0x2f4   : > { %v1357_v59 = vpop.eup %1356 }
 0x2f5   : > { %v768_v6 = vrot.slane %v1357_v59, %v767_v52  ;;  %v2747_v59 = vld [vmem:[#allocation40_spill] sm:$0xff] }
 0x2f7   : > { %774 = vbcast.lane.b32.xlu1 %v768_v6, 264  ;;  %770 = vbcast.lane.b32.xlu0 %v768_v6, 256 }
 0x2fb   : > { %778 = vbcast.lane.b32.xlu1 %v768_v6, 272  ;;  %786 = vbcast.lane.b32.xlu0 %v768_v6, 288 }
 0x2ff   : > { %782 = vbcast.lane.b32.xlu1 %v768_v6, 280  ;;  %794 = vbcast.lane.b32.xlu0 %v768_v6, 304 }
 0x303   : > { %790 = vbcast.lane.b32.xlu1 %v768_v6, 296  ;;  %802 = vbcast.lane.b32.xlu0 %v768_v6, 320 }
 0x307   : > { %798 = vbcast.lane.b32.xlu1 %v768_v6, 312  ;;  %810 = vbcast.lane.b32.xlu0 %v768_v6, 336 }
 0x30b   : > { %806 = vbcast.lane.b32.xlu1 %v768_v6, 328  ;;  %818 = vbcast.lane.b32.xlu0 %v768_v6, 352 }
 0x30f   : > { %814 = vbcast.lane.b32.xlu1 %v768_v6, 344  ;;  %826 = vbcast.lane.b32.xlu0 %v768_v6, 368 }
 0x313   : > { %822 = vbcast.lane.b32.xlu1 %v768_v6, 360 }
 0x317   : > { %830 = vbcast.lane.b32.xlu1 %v768_v6, 376 }
 0x369   : > { %v775_v18 = vpop.permute.xlu1 %774  ;;  %v771_v56 = vpop.permute.xlu0 %770 }
 0x36a   : > { %v840_v48 = vmul.f32 %v775_v18, %v1704_v13  ;;  %v841_v60 = vmul.f32 %v775_v18, %v1707_v14  ;;  %v842_v3 = vmul.f32 %v775_v18, %v1714_v17  ;;  %v843_v34 = vmul.f32 %v775_v18, %v1726_v22 }
 0x36b   : > { %v844_v44 = vmul.f32 %v775_v18, %v1747_v31  ;;  %v845_v23 = vmul.f32 %v775_v18, %v1764_v39  ;;  %v846_v61 = vmul.f32 %v775_v18, %v1778_v45  ;;  %v847_v58 = vmul.f32 %v775_v18, %v1799_v55 }
 0x36c   : > { %968 = vst [vmem:[%s2237_s15 + $0x40] sm:$0xff] %v840_v48  ;;  %969 = vst [vmem:[%s2237_s15 + $0x48] sm:$0xff] %v841_v60  ;;  %v832_v13 = vmul.f32 %v771_v56, %v1671_v0  ;;  %v833_v14 = vmul.f32 %v771_v56, %v1674_v1  ;;  %v834_v17 = vmul.f32 %v771_v56, %v1677_v2  ;;  %v2748_v48 = vld [vmem:[#allocation11_spill] sm:$0xff] }
 0x36d   : > { %970 = vst [vmem:[%s2237_s15 + $0x50] sm:$0xff] %v842_v3  ;;  %971 = vst [vmem:[%s2237_s15 + $0x58] sm:$0xff] %v843_v34  ;;  %v835_v22 = vmul.f32 %v771_v56, %v1682_v4  ;;  %v836_v31 = vmul.f32 %v771_v56, %v1695_v9  ;;  %v837_v39 = vmul.f32 %v771_v56, %v1710_v15  ;;  %v779_v45 = vpop.permute.xlu1 %778  ;;  %v787_v2 = vpop.permute.xlu0 %786  ;;  %v2749_v3 = vld [vmem:[#allocation12_spill] sm:$0xff] }
 0x36e   : > { %972 = vst [vmem:[%s2237_s15 + $0x60] sm:$0xff] %v844_v44  ;;  %973 = vst [vmem:[%s2237_s15 + $0x68] sm:$0xff] %v845_v23  ;;  %v838_v0 = vmul.f32 %v771_v56, %v1719_v19  ;;  %v839_v1 = vmul.f32 %v771_v56, %v1740_v28  ;;  %v848_v4 = vmul.f32 %v779_v45, %v1685_v5  ;;  %v2750_v44 = vld [vmem:[#allocation13_spill] sm:$0xff] }
 0x36f   : > { %974 = vst [vmem:[%s2237_s15 + $0x70] sm:$0xff] %v846_v61  ;;  %975 = vst [vmem:[%s2237_s15 + $0x78] sm:$0xff] %v847_v58  ;;  %v849_v9 = vmul.f32 %v779_v45, %v1689_v7  ;;  %v850_v15 = vmul.f32 %v779_v45, %v1692_v8  ;;  %v851_v19 = vmul.f32 %v779_v45, %v1701_v12  ;;  %v2751_v61 = vld [vmem:[#allocation15_spill] sm:$0xff] }
 0x370   : > { %960 = vst [vmem:[%s2237_s15] sm:$0xff] %v832_v13  ;;  %961 = vst [vmem:[%s2237_s15 + $0x8] sm:$0xff] %v833_v14  ;;  %v852_v28 = vmul.f32 %v779_v45, %v1723_v21  ;;  %v853_v55 = vmul.f32 %v779_v45, %v1744_v30  ;;  %v854_v5 = vmul.f32 %v779_v45, %v1752_v33  ;;  %v2752_v13 = vld [vmem:[#allocation20_spill] sm:$0xff] }
 0x371   : > { %962 = vst [vmem:[%s2237_s15 + $0x10] sm:$0xff] %v834_v17  ;;  %963 = vst [vmem:[%s2237_s15 + $0x18] sm:$0xff] %v835_v22  ;;  %v855_v7 = vmul.f32 %v779_v45, %v1774_v43  ;;  %v864_v8 = vmul.f32 %v787_v2, %v1760_v37  ;;  %v865_v12 = vmul.f32 %v787_v2, %v1768_v41  ;;  %v783_v49 = vpop.permute.xlu1 %782  ;;  %v2753_v17 = vld [vmem:[#allocation23_spill] sm:$0xff]  ;;  %v2756_v45 = vld [vmem:[#allocation29_spill] sm:$0xff] }
 0x372   : > { %964 = vst [vmem:[%s2237_s15 + $0x20] sm:$0xff] %v836_v31  ;;  %965 = vst [vmem:[%s2237_s15 + $0x28] sm:$0xff] %v837_v39  ;;  %v866_v21 = vmul.f32 %v787_v2, %v1771_v42  ;;  %v867_v30 = vmul.f32 %v787_v2, %v1789_v51  ;;  %v868_v33 = vmul.f32 %v787_v2, %v1816_v63  ;;  %v795_v42 = vpop.permute.xlu0 %794  ;;  %v2754_v31 = vld [vmem:[#allocation26_spill] sm:$0xff] }
 0x373   : > { %966 = vst [vmem:[%s2237_s15 + $0x30] sm:$0xff] %v838_v0  ;;  %967 = vst [vmem:[%s2237_s15 + $0x38] sm:$0xff] %v839_v1  ;;  %v869_v43 = vmul.f32 %v787_v2, %v1839_v32  ;;  %v870_v37 = vmul.f32 %v787_v2, %v1848_v40  ;;  %v871_v41 = vmul.f32 %v787_v2, %v1870_v62  ;;  %v2755_v0 = vld [vmem:[#allocation31_spill] sm:$0xff] }
 0x374   : > { %976 = vst [vmem:[%s2237_s15 + $0x80] sm:$0xff] %v848_v4  ;;  %977 = vst [vmem:[%s2237_s15 + $0x88] sm:$0xff] %v849_v9  ;;  %v856_v51 = vmul.f32 %v783_v49, %v1731_v25  ;;  %v857_v63 = vmul.f32 %v783_v49, %v1734_v26  ;;  %v858_v32 = vmul.f32 %v783_v49, %v1737_v27  ;;  %v2740_v27 = vld [vmem:[#allocation16_spill] sm:$0xff]  ;;  %v2757_v4 = vld [vmem:[#allocation30_spill] sm:$0xff] }
 0x375   : > { %978 = vst [vmem:[%s2237_s15 + $0x90] sm:$0xff] %v850_v15  ;;  %979 = vst [vmem:[%s2237_s15 + $0x98] sm:$0xff] %v851_v19  ;;  %v859_v40 = vmul.f32 %v783_v49, %v1757_v36  ;;  %v860_v62 = vmul.f32 %v783_v49, %v1782_v47  ;;  %v861_v29 = vmul.f32 %v783_v49, %v1803_v57  ;;  %v791_v18 = vpop.permute.xlu1 %790  ;;  %v2758_v15 = vld [vmem:[#allocation33_spill] sm:$0xff] }
 0x376   : > { %980 = vst [vmem:[%s2237_s15 + $0xa0] sm:$0xff] %v852_v28  ;;  %981 = vst [vmem:[%s2237_s15 + $0xa8] sm:$0xff] %v853_v55  ;;  %v862_v25 = vmul.f32 %v783_v49, %v2738_v50  ;;  %v863_v26 = vmul.f32 %v783_v49, %v2739_v11  ;;  %v880_v36 = vmul.f32 %v795_v42, %v2740_v27  ;;  %v803_v56 = vpop.permute.xlu0 %802  ;;  %v2759_v28 = vld [vmem:[#allocation36_spill] sm:$0xff]  ;;  %v2764_v49 = vld [vmem:[#allocation22_spill] sm:$0xff] }
 0x377   : > { %982 = vst [vmem:[%s2237_s15 + $0xb0] sm:$0xff] %v854_v5  ;;  %983 = vst [vmem:[%s2237_s15 + $0xb8] sm:$0xff] %v855_v7  ;;  %v881_v53 = vmul.f32 %v795_v42, %v2741_v10  ;;  %v882_v47 = vmul.f32 %v795_v42, %v2742_v38  ;;  %v883_v57 = vmul.f32 %v795_v42, %v2743_v24  ;;  %v2760_v5 = vld [vmem:[#allocation42_spill] sm:$0xff]  ;;  %v2768_v50 = vld [vmem:[#allocation35_spill] sm:$0xff] }
 0x378   : > { %992 = vst [vmem:[%s2237_s15 + $0x100] sm:$0xff] %v864_v8  ;;  %993 = vst [vmem:[%s2237_s15 + $0x108] sm:$0xff] %v865_v12  ;;  %v884_v35 = vmul.f32 %v795_v42, %v2744_v54  ;;  %v885_v16 = vmul.f32 %v795_v42, %v2745_v46  ;;  %v886_v52 = vmul.f32 %v795_v42, %v2746_v20  ;;  %v2761_v8 = vld [vmem:[#allocation46_spill] sm:$0xff]  ;;  %v2769_v11 = vld [vmem:[#allocation41_spill] sm:$0xff] }
 0x379   : > { %994 = vst [vmem:[%s2237_s15 + $0x110] sm:$0xff] %v866_v21  ;;  %995 = vst [vmem:[%s2237_s15 + $0x118] sm:$0xff] %v867_v30  ;;  %v887_v6 = vmul.f32 %v795_v42, %v2747_v59  ;;  %v872_v60 = vmul.f32 %v791_v18, %v2748_v48  ;;  %v873_v34 = vmul.f32 %v791_v18, %v2749_v3  ;;  %v2762_v21 = vld [vmem:[#allocation50_spill] sm:$0xff]  ;;  %v2770_v27 = vld [vmem:[#allocation43_spill] sm:$0xff] }
 0x37a   : > { %996 = vst [vmem:[%s2237_s15 + $0x120] sm:$0xff] %v868_v33  ;;  %997 = vst [vmem:[%s2237_s15 + $0x128] sm:$0xff] %v869_v43  ;;  %v874_v23 = vmul.f32 %v791_v18, %v2750_v44  ;;  %v875_v58 = vmul.f32 %v791_v18, %v2751_v61  ;;  %v876_v14 = vmul.f32 %v791_v18, %v2752_v13  ;;  %v2763_v33 = vld [vmem:[#allocation55_spill] sm:$0xff]  ;;  %v2771_v10 = vld [vmem:[#allocation49_spill] sm:$0xff] }
 0x37b   : > { %998 = vst [vmem:[%s2237_s15 + $0x130] sm:$0xff] %v870_v37  ;;  %999 = vst [vmem:[%s2237_s15 + $0x138] sm:$0xff] %v871_v41  ;;  %v877_v22 = vmul.f32 %v791_v18, %v2753_v17  ;;  %v878_v39 = vmul.f32 %v791_v18, %v2754_v31  ;;  %v879_v1 = vmul.f32 %v791_v18, %v2755_v0  ;;  %v799_v37 = vpop.permute.xlu1 %798  ;;  %v811_v41 = vpop.permute.xlu0 %810  ;;  %v2772_v38 = vld [vmem:[#allocation45_spill] sm:$0xff]  ;;  %v2773_v24 = vld [vmem:[#allocation47_spill] sm:$0xff] }
 0x37c   : > { %984 = vst [vmem:[%s2237_s15 + $0xc0] sm:$0xff] %v856_v51  ;;  %985 = vst [vmem:[%s2237_s15 + $0xc8] sm:$0xff] %v857_v63  ;;  %v896_v2 = vmul.f32 %v803_v56, %v2756_v45  ;;  %v897_v9 = vmul.f32 %v803_v56, %v2757_v4  ;;  %v898_v19 = vmul.f32 %v803_v56, %v2758_v15  ;;  %v2765_v51 = vld [vmem:[#allocation24_spill] sm:$0xff]  ;;  %v2776_v20 = vld [vmem:[#allocation59_spill] sm:$0xff] }
 0x37d   : > { %986 = vst [vmem:[%s2237_s15 + $0xd0] sm:$0xff] %v858_v32  ;;  %987 = vst [vmem:[%s2237_s15 + $0xd8] sm:$0xff] %v859_v40  ;;  %v899_v55 = vmul.f32 %v803_v56, %v2759_v28  ;;  %v900_v7 = vmul.f32 %v803_v56, %v2760_v5  ;;  %v901_v12 = vmul.f32 %v803_v56, %v2761_v8  ;;  %v2766_v32 = vld [vmem:[#allocation25_spill] sm:$0xff]  ;;  %v2774_v54 = vld [vmem:[#allocation48_spill] sm:$0xff] }
 0x37e   : > { %988 = vst [vmem:[%s2237_s15 + $0xe0] sm:$0xff] %v860_v62  ;;  %989 = vst [vmem:[%s2237_s15 + $0xe8] sm:$0xff] %v861_v29  ;;  %v902_v30 = vmul.f32 %v803_v56, %v2762_v21  ;;  %v903_v43 = vmul.f32 %v803_v56, %v2763_v33  ;;  %v888_v42 = vmul.f32 %v799_v37, %v2764_v49  ;;  %v2767_v62 = vld [vmem:[#allocation28_spill] sm:$0xff]  ;;  %v2777_v59 = vld [vmem:[#allocation65_spill] sm:$0xff] }
 0x37f   : > { %990 = vst [vmem:[%s2237_s15 + $0xf0] sm:$0xff] %v862_v25  ;;  %991 = vst [vmem:[%s2237_s15 + $0xf8] sm:$0xff] %v863_v26  ;;  %v889_v63 = vmul.f32 %v799_v37, %v2765_v51  ;;  %v890_v40 = vmul.f32 %v799_v37, %v2766_v32  ;;  %v891_v29 = vmul.f32 %v799_v37, %v2767_v62  ;;  %v2775_v46 = vld [vmem:[#allocation52_spill] sm:$0xff]  ;;  %v2778_v18 = vld [vmem:[#allocation67_spill] sm:$0xff]  ;;  %v807_v3 = vpop.permute.xlu1 %806 }
 0x380   : > { %1008 = vst [vmem:[%s2237_s15 + $0x180] sm:$0xff] %v880_v36  ;;  %1009 = vst [vmem:[%s2237_s15 + $0x188] sm:$0xff] %v881_v53  ;;  %v892_v25 = vmul.f32 %v799_v37, %v2768_v50  ;;  %v893_v26 = vmul.f32 %v799_v37, %v2769_v11  ;;  %v894_v36 = vmul.f32 %v799_v37, %v2770_v27  ;;  %v2779_v48 = vld [vmem:[#allocation73_spill] sm:$0xff]  ;;  %v2781_v61 = vld [vmem:[#allocation38_spill] sm:$0xff] }
 0x381   : > { %1010 = vst [vmem:[%s2237_s15 + $0x190] sm:$0xff] %v882_v47  ;;  %1011 = vst [vmem:[%s2237_s15 + $0x198] sm:$0xff] %v883_v57  ;;  %v895_v53 = vmul.f32 %v799_v37, %v2771_v10  ;;  %v912_v47 = vmul.f32 %v811_v41, %v2772_v38  ;;  %v913_v57 = vmul.f32 %v811_v41, %v2773_v24  ;;  %v2780_v44 = vld [vmem:[#allocation37_spill] sm:$0xff]  ;;  %v2782_v13 = vld [vmem:[#allocation39_spill] sm:$0xff] }
 0x382   : > { %1012 = vst [vmem:[%s2237_s15 + $0x1a0] sm:$0xff] %v884_v35  ;;  %1013 = vst [vmem:[%s2237_s15 + $0x1a8] sm:$0xff] %v885_v16  ;;  %v914_v35 = vmul.f32 %v811_v41, %v2774_v54  ;;  %v915_v16 = vmul.f32 %v811_v41, %v2775_v46  ;;  %v918_v56 = vmul.f32 %v811_v41, %v2778_v18  ;;  %v2783_v17 = vld [vmem:[#allocation44_spill] sm:$0xff]  ;;  %v2784_v31 = vld [vmem:[#allocation51_spill] sm:$0xff] }
 0x383   : > { %1014 = vst [vmem:[%s2237_s15 + $0x1b0] sm:$0xff] %v886_v52  ;;  %1015 = vst [vmem:[%s2237_s15 + $0x1b8] sm:$0xff] %v887_v6  ;;  %v916_v52 = vmul.f32 %v811_v41, %v2776_v20  ;;  %v917_v6 = vmul.f32 %v811_v41, %v2777_v59  ;;  %v2785_v0 = vld [vmem:[#allocation56_spill] sm:$0xff]  ;;  %v2786_v45 = vld [vmem:[#allocation58_spill] sm:$0xff]  ;;  %v815_v51 = vpop.permute.xlu1 %814 }
 0x384   : > { %1000 = vst [vmem:[%s2237_s15 + $0x140] sm:$0xff] %v872_v60  ;;  %1001 = vst [vmem:[%s2237_s15 + $0x148] sm:$0xff] %v873_v34  ;;  %v919_v60 = vmul.f32 %v811_v41, %v2779_v48  ;;  %v819_v34 = vpop.permute.xlu0 %818  ;;  %v2787_v4 = vld [vmem:[#allocation64_spill] sm:$0xff]  ;;  %v2788_v15 = vld [vmem:[#allocation61_spill] sm:$0xff] }
 0x385   : > { %1002 = vst [vmem:[%s2237_s15 + $0x150] sm:$0xff] %v874_v23  ;;  %1003 = vst [vmem:[%s2237_s15 + $0x158] sm:$0xff] %v875_v58  ;;  %v904_v23 = vmul.f32 %v807_v3, %v2780_v44  ;;  %v905_v58 = vmul.f32 %v807_v3, %v2781_v61  ;;  %v2789_v28 = vld [vmem:[#allocation62_spill] sm:$0xff]  ;;  %v2790_v5 = vld [vmem:[#allocation63_spill] sm:$0xff] }
 0x386   : > { %1004 = vst [vmem:[%s2237_s15 + $0x160] sm:$0xff] %v876_v14  ;;  %1005 = vst [vmem:[%s2237_s15 + $0x168] sm:$0xff] %v877_v22  ;;  %v906_v14 = vmul.f32 %v807_v3, %v2782_v13  ;;  %v907_v22 = vmul.f32 %v807_v3, %v2783_v17  ;;  %v2791_v8 = vld [vmem:[#allocation68_spill] sm:$0xff]  ;;  %v2792_v21 = vld [vmem:[#allocation75_spill] sm:$0xff] }
 0x387   : > { %1006 = vst [vmem:[%s2237_s15 + $0x170] sm:$0xff] %v878_v39  ;;  %1007 = vst [vmem:[%s2237_s15 + $0x178] sm:$0xff] %v879_v1  ;;  %v908_v39 = vmul.f32 %v807_v3, %v2784_v31  ;;  %v909_v1 = vmul.f32 %v807_v3, %v2785_v0  ;;  %v2793_v33 = vld [vmem:[#allocation80_spill] sm:$0xff]  ;;  %v2794_v37 = vld [vmem:[#allocation82_spill] sm:$0xff]  ;;  %v823_v61 = vpop.permute.xlu1 %822 }
 0x388   : > { %1024 = vst [vmem:[%s2237_s15 + $0x200] sm:$0xff] %v896_v2  ;;  %1025 = vst [vmem:[%s2237_s15 + $0x208] sm:$0xff] %v897_v9  ;;  %v910_v2 = vmul.f32 %v807_v3, %v2786_v45  ;;  %v911_v9 = vmul.f32 %v807_v3, %v2787_v4  ;;  %v934_v41 = vmul.f32 %v819_v34, %v2794_v37  ;;  %v2795_v49 = vld [vmem:[#allocation85_spill] sm:$0xff]  ;;  %v2797_v62 = vld [vmem:[#allocation54_spill] sm:$0xff] }
 0x389   : > { %1026 = vst [vmem:[%s2237_s15 + $0x210] sm:$0xff] %v898_v19  ;;  %1027 = vst [vmem:[%s2237_s15 + $0x218] sm:$0xff] %v899_v55  ;;  %v928_v19 = vmul.f32 %v819_v34, %v2788_v15  ;;  %v929_v55 = vmul.f32 %v819_v34, %v2789_v28  ;;  %v2796_v32 = vld [vmem:[#allocation53_spill] sm:$0xff]  ;;  %v2799_v11 = vld [vmem:[#allocation60_spill] sm:$0xff] }
 0x38a   : > { %1028 = vst [vmem:[%s2237_s15 + $0x220] sm:$0xff] %v900_v7  ;;  %1029 = vst [vmem:[%s2237_s15 + $0x228] sm:$0xff] %v901_v12  ;;  %v930_v7 = vmul.f32 %v819_v34, %v2790_v5  ;;  %v931_v12 = vmul.f32 %v819_v34, %v2791_v8  ;;  %v2798_v50 = vld [vmem:[#allocation57_spill] sm:$0xff]  ;;  %v2800_v27 = vld [vmem:[#allocation66_spill] sm:$0xff] }
 0x38b   : > { %1030 = vst [vmem:[%s2237_s15 + $0x230] sm:$0xff] %v902_v30  ;;  %1031 = vst [vmem:[%s2237_s15 + $0x238] sm:$0xff] %v903_v43  ;;  %v932_v30 = vmul.f32 %v819_v34, %v2792_v21  ;;  %v933_v43 = vmul.f32 %v819_v34, %v2793_v33  ;;  %v2801_v10 = vld [vmem:[#allocation70_spill] sm:$0xff]  ;;  %v2803_v24 = vld [vmem:[#allocation79_spill] sm:$0xff] }
 0x38c   : > { %1016 = vst [vmem:[%s2237_s15 + $0x1c0] sm:$0xff] %v888_v42  ;;  %1017 = vst [vmem:[%s2237_s15 + $0x1c8] sm:$0xff] %v889_v63  ;;  %v935_v42 = vmul.f32 %v819_v34, %v2795_v49  ;;  %v827_v63 = vpop.permute.xlu0 %826  ;;  %v2802_v38 = vld [vmem:[#allocation74_spill] sm:$0xff]  ;;  %v2804_v54 = vld [vmem:[#allocation77_spill] sm:$0xff] }
 0x38d   : > { %1018 = vst [vmem:[%s2237_s15 + $0x1d0] sm:$0xff] %v890_v40  ;;  %1019 = vst [vmem:[%s2237_s15 + $0x1d8] sm:$0xff] %v891_v29  ;;  %v920_v40 = vmul.f32 %v815_v51, %v2796_v32  ;;  %v921_v29 = vmul.f32 %v815_v51, %v2797_v62  ;;  %v2805_v46 = vld [vmem:[#allocation78_spill] sm:$0xff]  ;;  %v2806_v20 = vld [vmem:[#allocation81_spill] sm:$0xff] }
 0x38e   : > { %1020 = vst [vmem:[%s2237_s15 + $0x1e0] sm:$0xff] %v892_v25  ;;  %1021 = vst [vmem:[%s2237_s15 + $0x1e8] sm:$0xff] %v893_v26  ;;  %v922_v25 = vmul.f32 %v815_v51, %v2798_v50  ;;  %v923_v26 = vmul.f32 %v815_v51, %v2799_v11  ;;  %v2807_v59 = vld [vmem:[#allocation84_spill] sm:$0xff]  ;;  %v2808_v18 = vld [vmem:[#allocation91_spill] sm:$0xff] }
 0x38f   : > { %1022 = vst [vmem:[%s2237_s15 + $0x1f0] sm:$0xff] %v894_v36  ;;  %1023 = vst [vmem:[%s2237_s15 + $0x1f8] sm:$0xff] %v895_v53  ;;  %v924_v36 = vmul.f32 %v815_v51, %v2800_v27  ;;  %v925_v53 = vmul.f32 %v815_v51, %v2801_v10  ;;  %v2809_v48 = vld [vmem:[#allocation92_spill] sm:$0xff]  ;;  %v2811_v44 = vld [vmem:[#allocation98_spill] sm:$0xff] }
 0x390   : > { %1040 = vst [vmem:[%s2237_s15 + $0x280] sm:$0xff] %v912_v47  ;;  %1041 = vst [vmem:[%s2237_s15 + $0x288] sm:$0xff] %v913_v57  ;;  %v926_v47 = vmul.f32 %v815_v51, %v2802_v38  ;;  %v927_v57 = vmul.f32 %v815_v51, %v2803_v24  ;;  %v2810_v3 = vld [vmem:[#allocation96_spill] sm:$0xff]  ;;  %v2820_v5 = vld [vmem:[#allocation86_spill] sm:$0xff] }
 0x391   : > { %1042 = vst [vmem:[%s2237_s15 + $0x290] sm:$0xff] %v914_v35  ;;  %1043 = vst [vmem:[%s2237_s15 + $0x298] sm:$0xff] %v915_v16  ;;  %v944_v35 = vmul.f32 %v827_v63, %v2804_v54  ;;  %v945_v16 = vmul.f32 %v827_v63, %v2805_v46  ;;  %v950_v34 = vmul.f32 %v827_v63, %v2810_v3  ;;  %v2821_v8 = vld [vmem:[#allocation87_spill] sm:$0xff]  ;;  %v2822_v21 = vld [vmem:[#allocation88_spill] sm:$0xff] }
 0x392   : > { %1044 = vst [vmem:[%s2237_s15 + $0x2a0] sm:$0xff] %v916_v52  ;;  %1045 = vst [vmem:[%s2237_s15 + $0x2a8] sm:$0xff] %v917_v6  ;;  %v946_v52 = vmul.f32 %v827_v63, %v2806_v20  ;;  %v947_v6 = vmul.f32 %v827_v63, %v2807_v59  ;;  %v2823_v33 = vld [vmem:[#allocation93_spill] sm:$0xff]  ;;  %v2824_v37 = vld [vmem:[#allocation94_spill] sm:$0xff] }
 0x393   : > { %1046 = vst [vmem:[%s2237_s15 + $0x2b0] sm:$0xff] %v918_v56  ;;  %1047 = vst [vmem:[%s2237_s15 + $0x2b8] sm:$0xff] %v919_v60  ;;  %v948_v56 = vmul.f32 %v827_v63, %v2808_v18  ;;  %v949_v60 = vmul.f32 %v827_v63, %v2809_v48  ;;  %v2825_v49 = vld [vmem:[#allocation97_spill] sm:$0xff]  ;;  %v2826_v51 = vld [vmem:[#allocation99_spill] sm:$0xff] }
 0x394   : > { %1032 = vst [vmem:[%s2237_s15 + $0x240] sm:$0xff] %v904_v23  ;;  %1033 = vst [vmem:[%s2237_s15 + $0x248] sm:$0xff] %v905_v58  ;;  %v951_v23 = vmul.f32 %v827_v63, %v2811_v44  ;;  %v2812_v58 = vld [vmem:[#allocation69_spill] sm:$0xff]  ;;  %v2827_v32 = vld [vmem:[#allocation100_spill] sm:$0xff] }
 0x395   : > { %1034 = vst [vmem:[%s2237_s15 + $0x250] sm:$0xff] %v906_v14  ;;  %1035 = vst [vmem:[%s2237_s15 + $0x258] sm:$0xff] %v907_v22  ;;  %v936_v13 = vmul.f32 %v823_v61, %v2812_v58  ;;  %v2813_v14 = vld [vmem:[#allocation71_spill] sm:$0xff]  ;;  %v2814_v22 = vld [vmem:[#allocation72_spill] sm:$0xff] }
 0x396   : > { %1036 = vst [vmem:[%s2237_s15 + $0x260] sm:$0xff] %v908_v39  ;;  %1037 = vst [vmem:[%s2237_s15 + $0x268] sm:$0xff] %v909_v1  ;;  %v937_v17 = vmul.f32 %v823_v61, %v2813_v14  ;;  %v938_v31 = vmul.f32 %v823_v61, %v2814_v22  ;;  %v2815_v39 = vld [vmem:[#allocation76_spill] sm:$0xff]  ;;  %v2816_v1 = vld [vmem:[#allocation83_spill] sm:$0xff] }
 0x397   : > { %1038 = vst [vmem:[%s2237_s15 + $0x270] sm:$0xff] %v910_v2  ;;  %1039 = vst [vmem:[%s2237_s15 + $0x278] sm:$0xff] %v911_v9  ;;  %v939_v0 = vmul.f32 %v823_v61, %v2815_v39  ;;  %v940_v45 = vmul.f32 %v823_v61, %v2816_v1  ;;  %v2817_v2 = vld [vmem:[#allocation89_spill] sm:$0xff]  ;;  %v2818_v9 = vld [vmem:[#allocation90_spill] sm:$0xff] }
 0x398   : > { %1056 = vst [vmem:[%s2237_s15 + $0x300] sm:$0xff] %v928_v19  ;;  %1057 = vst [vmem:[%s2237_s15 + $0x308] sm:$0xff] %v929_v55  ;;  %v941_v4 = vmul.f32 %v823_v61, %v2817_v2  ;;  %v942_v15 = vmul.f32 %v823_v61, %v2818_v9  ;;  %v2819_v19 = vld [vmem:[#allocation95_spill] sm:$0xff]  ;;  %v831_v55 = vpop.permute.xlu1 %830 }
 0x399   : > { %1058 = vst [vmem:[%s2237_s15 + $0x310] sm:$0xff] %v930_v7  ;;  %1059 = vst [vmem:[%s2237_s15 + $0x318] sm:$0xff] %v931_v12  ;;  %v943_v28 = vmul.f32 %v823_v61, %v2819_v19  ;;  %v952_v7 = vmul.f32 %v831_v55, %v2820_v5  ;;  %v953_v12 = vmul.f32 %v831_v55, %v2821_v8 }
 0x39a   : > { %1060 = vst [vmem:[%s2237_s15 + $0x320] sm:$0xff] %v932_v30  ;;  %1061 = vst [vmem:[%s2237_s15 + $0x328] sm:$0xff] %v933_v43  ;;  %v954_v30 = vmul.f32 %v831_v55, %v2822_v21  ;;  %v955_v43 = vmul.f32 %v831_v55, %v2823_v33  ;;  %v958_v63 = vmul.f32 %v831_v55, %v2826_v51 }
 0x39b   : > { %1062 = vst [vmem:[%s2237_s15 + $0x330] sm:$0xff] %v934_v41  ;;  %1063 = vst [vmem:[%s2237_s15 + $0x338] sm:$0xff] %v935_v42  ;;  %v956_v41 = vmul.f32 %v831_v55, %v2824_v37  ;;  %v957_v42 = vmul.f32 %v831_v55, %v2825_v49 }
 0x39c   : > { %1048 = vst [vmem:[%s2237_s15 + $0x2c0] sm:$0xff] %v920_v40  ;;  %1049 = vst [vmem:[%s2237_s15 + $0x2c8] sm:$0xff] %v921_v29  ;;  %v959_v40 = vmul.f32 %v831_v55, %v2827_v32 }
 0x39d   : > { %1050 = vst [vmem:[%s2237_s15 + $0x2d0] sm:$0xff] %v922_v25  ;;  %1051 = vst [vmem:[%s2237_s15 + $0x2d8] sm:$0xff] %v923_v26 }
 0x39e   : > { %1052 = vst [vmem:[%s2237_s15 + $0x2e0] sm:$0xff] %v924_v36  ;;  %1053 = vst [vmem:[%s2237_s15 + $0x2e8] sm:$0xff] %v925_v53 }
 0x39f   : > { %1054 = vst [vmem:[%s2237_s15 + $0x2f0] sm:$0xff] %v926_v47  ;;  %1055 = vst [vmem:[%s2237_s15 + $0x2f8] sm:$0xff] %v927_v57 }
 0x3a0   : > { %1072 = vst [vmem:[%s2237_s15 + $0x380] sm:$0xff] %v944_v35  ;;  %1073 = vst [vmem:[%s2237_s15 + $0x388] sm:$0xff] %v945_v16 }
 0x3a1   : > { %1074 = vst [vmem:[%s2237_s15 + $0x390] sm:$0xff] %v946_v52  ;;  %1075 = vst [vmem:[%s2237_s15 + $0x398] sm:$0xff] %v947_v6 }
 0x3a2   : > { %1076 = vst [vmem:[%s2237_s15 + $0x3a0] sm:$0xff] %v948_v56  ;;  %1077 = vst [vmem:[%s2237_s15 + $0x3a8] sm:$0xff] %v949_v60 }
 0x3a3   : > { %1078 = vst [vmem:[%s2237_s15 + $0x3b0] sm:$0xff] %v950_v34  ;;  %1079 = vst [vmem:[%s2237_s15 + $0x3b8] sm:$0xff] %v951_v23 }
 0x3a4   : > { %1064 = vst [vmem:[%s2237_s15 + $0x340] sm:$0xff] %v936_v13  ;;  %1065 = vst [vmem:[%s2237_s15 + $0x348] sm:$0xff] %v937_v17 }
 0x3a5   : > { %1066 = vst [vmem:[%s2237_s15 + $0x350] sm:$0xff] %v938_v31  ;;  %1067 = vst [vmem:[%s2237_s15 + $0x358] sm:$0xff] %v939_v0 }
 0x3a6   : > { %1068 = vst [vmem:[%s2237_s15 + $0x360] sm:$0xff] %v940_v45  ;;  %1069 = vst [vmem:[%s2237_s15 + $0x368] sm:$0xff] %v941_v4 }
 0x3a7   : > { %1070 = vst [vmem:[%s2237_s15 + $0x370] sm:$0xff] %v942_v15  ;;  %1071 = vst [vmem:[%s2237_s15 + $0x378] sm:$0xff] %v943_v28 }
 0x3a8   : > { %1080 = vst [vmem:[%s2237_s15 + $0x3c0] sm:$0xff] %v952_v7  ;;  %1081 = vst [vmem:[%s2237_s15 + $0x3c8] sm:$0xff] %v953_v12 }
 0x3a9   : > { %1082 = vst [vmem:[%s2237_s15 + $0x3d0] sm:$0xff] %v954_v30  ;;  %1083 = vst [vmem:[%s2237_s15 + $0x3d8] sm:$0xff] %v955_v43 }
 0x3aa   : > { %1084 = vst [vmem:[%s2237_s15 + $0x3e0] sm:$0xff] %v956_v41  ;;  %1085 = vst [vmem:[%s2237_s15 + $0x3e8] sm:$0xff] %v957_v42 }
 0x3ab   : > { %1086 = vst [vmem:[%s2237_s15 + $0x3f0] sm:$0xff] %v958_v63  ;;  %1087 = vst [vmem:[%s2237_s15 + $0x3f8] sm:$0xff] %v959_v40 }
 0x3ac   : > { %1429 = shalt.err (!%p1426_p7)
}
 0x3ad   : > { %s1430_s18 = scalar_lea.hbm %s2480_s23, 16384  ;;  %s1434_s20 = scalar_lea.hbm %s2540_s2, 32768 }
 0x3ae   : > { %p1431_p9 = scmp.ne.s32.totalorder %s2480_s23, %s1430_s18  ;;  %p1435_p5 = scmp.lt.u32.totalorder %s2480_s23, %s2540_s2 }
 0x3af   : > { %p1436_p11 = scmp.lt.u32.totalorder %s1434_s20, %s1430_s18  ;;  %p1438_p4 = scmp.lt.u32.totalorder %s1430_s18, %s2480_s23 }
 0x3b0   : > { %p1432_p2 = pnand %p1431_p9, %p1606_p12 }
 0x3b1   : > { %p1437_p1 = por %p1436_p11, %p1435_p5 }
 0x3b2   : > { %p1433_p0 = pneg %p1432_p2 }
 0x3b3   : > { %p1439_p6 = por %p1438_p4, %p1437_p1 }
 0x3b5   : > { %p1440_p8 = pnand %p1439_p6, %p1433_p0 }
 0x3b7   : > { %1443 = shalt.err (!%p1440_p8)
}
 0x3b8   : > { %s1498_s30 = smov 1024   ;;  %s1499_s3 = smov 64  }
 0x3b9   : > { %1294 = dma.vmem_to_hbm [thread:$0]  (%p1606_p12), %s2482_s27, 16384, %s2480_s23, %s1089_s28, %s1498_s30, %s1498_s30, %s1499_s3  }
 0x3ba PF: > { %s1117_s15 = sand.u32 1, %s1474_s9   ;;  %p2828_p10 = scmp.ne.s32.totalorder %s2637_s16, 0 }
 0x3bb   : > { %p2829_p13 = scmp.ge.s32.totalorder %s1486_s12, 2  ;;  %s1118_s17 = scalar_lea.sflag [#allocation4], %s1117_s15 }
 0x3bd   : > { %p1305_p3 = pnand %p2829_p13, %p2828_p10 }
 0x3bf   : > { %1469 = dma.done.wait (!%p1305_p3), %s1118_s17, 16384  }
 0x3c0   : > { %1471 = vsyncadd (!%p1305_p3), %s1118_s17, 4294950912  ;;  %p16_p7 = scmp.ge.s32.totalorder %s1571_s21, 4   ;;  %s2830_s9 = smov %s1478_s10 }
 0x3c1   : > { %s2831_s10 = smov %s1482_s11  ;;  %s2832_s11 = smov %s1602_s8 }
 0x3c2   : > { %s2833_s12 = smov %s1571_s21  ;;  %18 = sbr.rel (!%p16_p7) target bundleno = 6 (0x6), region = 77 }
 0x3c9   :  { %1123 = vsyncpa [#allocation3], 1 }
 0x3ca   :  { %1125 = vsyncpa [#allocation3 + $0x1], 1 }
 0x3cb   :  { %1126 = vsyncpa [#allocation6], 1 }
 0x3cc   :  { %1127 = vsyncpa [#allocation4], 1 }
 0x3cd   :  { %1129 = vsyncpa [#allocation4 + $0x1], 1 }

</bundles_post_ra>
